<compile_context>
chip_gen: v7x
topology: tpu7x:2x2x1
jax: 0.10.0
libtpu: 0.0.40
codegen_flags: <defaults>
</compile_context>

<pallas_src>
import math

import numpy as np
import jax
import jax.numpy as jnp
from jax.experimental import pallas as pl
from jax.experimental.pallas import tpu as pltpu


_TWO_PI = np.float32(2.0 * np.pi)
_INV_TWO_PI = np.float32(1.0 / (2.0 * np.pi))

# MXU operand dtype. bf16 is native on v5e/v6e/v7x MXUs (~2-3x over emulated f32
# matmul); phase error is ~1e-3..1e-2 — set to jnp.float32 if tolerance requires.
_MXU_DTYPE = jnp.bfloat16

try:
    _VMEM_CAP = int(pltpu.get_tpu_info().vmem_capacity_bytes)
except Exception:  # noqa: BLE001  (query may not be available off-device)
    _VMEM_CAP = 64 * 1024 * 1024
# <= 48 MiB on v7x (64 MiB VMEM/TC), ~96 MiB on v5e/v6e (128 MiB).
_VMEM_LIMIT = min((3 * _VMEM_CAP) // 4, 100 * 1024 * 1024)


def _cp(sems):
    return pltpu.CompilerParams(dimension_semantics=sems,
                                vmem_limit_bytes=_VMEM_LIMIT)


def _round_up(x, m):
    return ((x + m - 1) // m) * m


def _choose_tile(n, cap, align, min_blocks=2):
    """Largest convenient row tile <= ~cap, aligned, with >= min_blocks grid
    steps whenever the problem size allows it (keeps both v7x TCs busy)."""
    n = max(int(n), 1)
    if n <= cap:
        tile = _round_up(n, align)
    else:
        n_blocks = -(-n // cap)
        tile = _round_up(-(-n // n_blocks), align)
    while min_blocks > 1 and tile > align and -(-n // tile) < min_blocks:
        tile = _round_up(-(-tile // 2), align)
    return tile


# ----------------------------------------------------------------------------
# Pallas kernels
# ----------------------------------------------------------------------------
def _stft_polar_kernel(frames_ref, dft_ref, ang_ref, nrm_ref):
    # frames: (tile, n_fft); dft: (n_fft, 2*NFp) VMEM-resident.
    # Fused: windowed DFT matmul (MXU, bf16 operands) + polar decomposition.
    x = frames_ref[...].astype(dft_ref.dtype)
    y = jnp.dot(x, dft_ref[...], preferred_element_type=jnp.float32)
    nfp = ang_ref.shape[-1]
    re = y[:, :nfp]
    im = y[:, nfp:]
    ang_ref[...] = jnp.arctan2(im, re)
    nrm_ref[...] = jnp.sqrt(re * re + im * im)


def _pv_idft_kernel(a0_ref, a1_ref, n0_ref, n1_ref, alpha_ref, padv_ref,
                    ph0_ref, tril_ref, gcos_ref, gsin_ref, out_ref, acc_ref):
    # Fused phase vocoder + phase cumsum + inverse DFT.
    # a*/n*: (1, tileL, NFp); alpha: (1, tileL, 1); padv/ph0: (1, 1, NFp);
    # tril: (tileL, tileL); gcos/gsin: (NFp, NFTp) resident; out: (1, tileL, NFTp);
    # acc (VMEM scratch, (1, NFp)) carries the running phase across L blocks.
    lb = pl.program_id(1)

    @pl.when(lb == 0)
    def _():
        acc_ref[...] = ph0_ref[0]          # phase of frame 0 of this batch row

    a0 = a0_ref[0]
    a1 = a1_ref[0]
    n0 = n0_ref[0]
    n1 = n1_ref[0]
    alpha = alpha_ref[0]                    # (tileL, 1)
    padv = padv_ref[0]                      # (1, NFp)

    d = a1 - a0 - padv
    d = d - _TWO_PI * jnp.round(d * _INV_TWO_PI)
    d = d + padv                            # per-frame phase increment (f32)

    # Exclusive prefix-sum along the frame axis via a strictly-lower-triangular
    # matmul (MXU, f32): keeps the scan fused instead of an XLA cumsum pass.
    excl = jnp.dot(tril_ref[...], d, preferred_element_type=jnp.float32)
    carry = acc_ref[...]
    phase_acc = carry + excl
    acc_ref[...] = carry + excl[-1:, :] + d[-1:, :]   # += full-block sum

    mag = alpha * n1 + (1.0 - alpha) * n0
    re = mag * jnp.cos(phase_acc)
    im = mag * jnp.sin(phase_acc)
    cd = gcos_ref.dtype
    out_ref[0] = (
        jnp.dot(re.astype(cd), gcos_ref[...], preferred_element_type=jnp.float32)
        + jnp.dot(im.astype(cd), gsin_ref[...], preferred_element_type=jnp.float32))


def _resample_kernel(xg_ref, w_ref, out_ref):
    # xg: (B, K, tile_n); w: (K, tile_n) shared across batch -> out: (B, tile_n).
    out_ref[...] = jnp.sum(xg_ref[...] * w_ref[...][None, :, :], axis=1)


# ----------------------------------------------------------------------------
# Stages (glue + pallas_call wrappers)
# ----------------------------------------------------------------------------
def spectrogram_polar(x, n_fft, hop, window_np):
    """STFT (center=True, reflect pad, onesided, power=None) fused with polar
    decomposition. Returns (angle, norm) with shape (B, n_frames, NFp)."""
    B, T = x.shape
    pad = n_fft // 2
    xp = jnp.pad(x, ((0, 0), (pad, pad)), mode="reflect")
    Lw = xp.shape[1]
    n_frames = 1 + (Lw - n_fft) // hop

    # Framing via R dense shifted slices (no XLA gather).
    R = -(-n_fft // hop)
    xp2 = jnp.pad(xp, ((0, 0), (0, R * hop)))
    pieces = []
    for r in range(R):
        w = min(hop, n_fft - r * hop)
        p = xp2[:, r * hop:r * hop + n_frames * hop]
        p = p.reshape(B, n_frames, hop)[:, :, :w]
        pieces.append(p)
    frames = jnp.concatenate(pieces, axis=-1).reshape(B * n_frames, n_fft)
    # TODO(synk): DMA a raw-sample slab per grid step (memory_space=pl.ANY +
    # make_async_copy) and build the overlapping windows in VMEM to avoid
    # materializing the ~2x framed copy in HBM.

    n_freq = n_fft // 2 + 1
    nfp = _round_up(n_freq, 128)                               # lane-aligned freq
    n = np.arange(n_fft, dtype=np.float64)[:, None]
    f = np.arange(n_freq, dtype=np.float64)[None, :]
    ang = 2.0 * np.pi * n * f / n_fft
    w64 = window_np.astype(np.float64)[:, None]
    dft = np.zeros((n_fft, 2 * nfp), np.float64)
    dft[:, :n_freq] = np.cos(ang) * w64
    dft[:, nfp:nfp + n_freq] = -np.sin(ang) * w64
    dft = jnp.asarray(dft, _MXU_DTYPE)                         # (n_fft, 2*NFp)

    M = B * n_frames
    tile = _choose_tile(M, cap=1024, align=8)
    n_blocks = -(-M // tile)
    m_pad = n_blocks * tile
    if m_pad > M:
        frames = jnp.pad(frames, ((0, m_pad - M), (0, 0)))

    out_spec = pl.BlockSpec((tile, nfp), lambda i: (i, 0))
    angle, norm = pl.pallas_call(
        _stft_polar_kernel,
        grid=(n_blocks,),
        in_specs=[pl.BlockSpec((tile, n_fft), lambda i: (i, 0)),
                  pl.BlockSpec((n_fft, 2 * nfp), lambda i: (0, 0))],
        out_specs=(out_spec, out_spec),
        out_shape=(jax.ShapeDtypeStruct((m_pad, nfp), jnp.float32),
                   jax.ShapeDtypeStruct((m_pad, nfp), jnp.float32)),
        compiler_params=_cp(("parallel",)),
    )(frames, dft)
    angle = angle[:M].reshape(B, n_frames, nfp)
    norm = norm[:M].reshape(B, n_frames, nfp)
    return angle, norm, n_freq, nfp


def stretch_and_synthesize(angle, norm, rate, hop, n_fft, win_length,
                           n_freq, nfp):
    """torchaudio phase_vocoder (fixed rate) fused with the phase cumsum and the
    inverse DFT. Returns time-domain frames (B, L, n_fft) and the synthesis
    window (numpy, for the OLA envelope)."""
    B, T, _ = angle.shape
    time_steps = np.arange(0, T, rate, dtype=np.float64)       # host f64 indices
    L = time_steps.shape[0]
    alphas = (time_steps % 1.0).astype(np.float32)
    idx0 = np.floor(time_steps).astype(np.int64)

    ang_p = jnp.pad(angle, ((0, 0), (0, 2), (0, 0)))
    nrm_p = jnp.pad(norm, ((0, 0), (0, 2), (0, 0)))
    a0 = ang_p[:, idx0, :]
    a1 = ang_p[:, idx0 + 1, :]
    n0 = nrm_p[:, idx0, :]
    n1 = nrm_p[:, idx0 + 1, :]
    # TODO(synk): scalar-prefetch idx0 and gather the neighbouring frames from a
    # per-tile contiguous slab inside the kernel to avoid materializing these
    # four (B, L, NFp) copies in HBM (~2-3x read-traffic cut for this stage).

    # tril cumsum cost grows ~ tileL^2, so keep the L tile moderate.
    tileL = _choose_tile(L, cap=256, align=8)
    n_lblk = -(-L // tileL)
    l_pad = n_lblk * tileL
    if l_pad > L:
        padt = ((0, 0), (0, l_pad - L), (0, 0))
        a0 = jnp.pad(a0, padt)
        a1 = jnp.pad(a1, padt)
        n0 = jnp.pad(n0, padt)
        n1 = jnp.pad(n1, padt)

    alpha = np.zeros((1, l_pad, 1), np.float32)
    alpha[0, :L, 0] = alphas
    alpha = jnp.asarray(alpha)

    padv = np.zeros((1, 1, nfp), np.float32)
    padv[0, 0, :n_freq] = np.linspace(0.0, np.pi * hop, n_freq)
    padv = jnp.asarray(padv)

    phase0 = angle[:, :1, :]                                   # (B, 1, NFp)
    tril = jnp.asarray(np.tril(np.ones((tileL, tileL), np.float32), k=-1))

    # Inverse-DFT synthesis matrices. The spec calls F.istft with no window, so
    # the synthesis window is torch.istft's default ones(win_length), centred.
    nftp = _round_up(n_fft, 128)
    win = np.zeros(n_fft, np.float64)
    lp = (n_fft - win_length) // 2
    win[lp:lp + win_length] = 1.0
    n = np.arange(n_fft, dtype=np.float64)[None, :]
    f = np.arange(n_freq, dtype=np.float64)[:, None]
    ang = 2.0 * np.pi * f * n / n_fft
    c = np.full((n_freq, 1), 2.0)
    c[0, 0] = 1.0
    if n_fft % 2 == 0:
        c[-1, 0] = 1.0
    gcos = np.zeros((nfp, nftp), np.float64)
    gsin = np.zeros((nfp, nftp), np.float64)
    gcos[:n_freq, :n_fft] = (c * np.cos(ang) / n_fft) * win[None, :]
    gsin[:n_freq, :n_fft] = (-c * np.sin(ang) / n_fft) * win[None, :]
    gcos = jnp.asarray(gcos, _MXU_DTYPE)
    gsin = jnp.asarray(gsin, _MXU_DTYPE)

    row = pl.BlockSpec((1, tileL, nfp), lambda b, l: (b, l, 0))
    frames = pl.pallas_call(
        _pv_idft_kernel,
        grid=(B, n_lblk),
        in_specs=[row, row, row, row,
                  pl.BlockSpec((1, tileL, 1), lambda b, l: (0, l, 0)),
                  pl.BlockSpec((1, 1, nfp), lambda b, l: (0, 0, 0)),
                  pl.BlockSpec((1, 1, nfp), lambda b, l: (b, 0, 0)),
                  pl.BlockSpec((tileL, tileL), lambda b, l: (0, 0)),
                  pl.BlockSpec((nfp, nftp), lambda b, l: (0, 0)),
                  pl.BlockSpec((nfp, nftp), lambda b, l: (0, 0))],
        out_specs=pl.BlockSpec((1, tileL, nftp), lambda b, l: (b, l, 0)),
        out_shape=jax.ShapeDtypeStruct((B, l_pad, nftp), jnp.float32),
        scratch_shapes=[pltpu.VMEM((1, nfp), jnp.float32)],
        compiler_params=_cp(("parallel", "arbitrary")),
    )(a0, a1, n0, n1, alpha, padv, phase0, tril, gcos, gsin)

    frames = frames[:, :L, :n_fft]
    return frames, win


def overlap_add(frames, win, n_fft, hop):
    """torch.istft overlap-add + window-square normalization, center trim.
    Dense shifted adds (no scatter); envelope precomputed on the host."""
    B, L, _ = frames.shape
    out_len = n_fft + hop * (L - 1)
    R = -(-n_fft // hop)
    fpad = R * hop
    if fpad > n_fft:
        frames = jnp.pad(frames, ((0, 0), (0, 0), (0, fpad - n_fft)))
    buf_len = (L - 1) * hop + fpad
    y = jnp.zeros((B, buf_len), jnp.float32)
    for r in range(R):
        chunk = frames[:, :, r * hop:(r + 1) * hop].reshape(B, L * hop)
        y = y + jnp.pad(chunk, ((0, 0), (r * hop, (R - 1 - r) * hop)))
    y = y[:, :out_len]

    # window-square envelope is a compile-time constant of (win, hop, L).
    env = np.zeros(out_len, np.float64)
    idx = (np.arange(L)[:, None] * hop + np.arange(n_fft)[None, :]).ravel()
    np.add.at(env, idx, np.tile(win * win, L))
    inv_env = jnp.asarray(1.0 / np.maximum(env, 1e-11), jnp.float32)
    y = y * inv_env[None, :]

    pad = n_fft // 2
    return y[:, pad:out_len - pad]                              # length hop*(L-1)


def resample(x, orig_freq, new_freq, lowpass_filter_width=6, rolloff=0.99):
    """Windowed-sinc resampling (torchaudio 'sinc_interpolation' semantics)."""
    B, T = x.shape
    g = math.gcd(orig_freq, new_freq)
    orig, new = orig_freq // g, new_freq // g
    base = min(orig, new) * rolloff
    width = int(math.ceil(lowpass_filter_width * orig / base))   # taps per side
    n_out = int(math.ceil(new_freq * T / orig_freq))

    tile = _choose_tile(n_out, cap=1024, align=128)
    n_blocks = -(-n_out // tile)
    n_pad = n_blocks * tile

    m = np.arange(n_out, dtype=np.float64)
    centers = m * orig / new
    j0 = np.floor(centers).astype(np.int64)
    offs = np.arange(-width, width + 1, dtype=np.int64)
    j = j0[:, None] + offs[None, :]                              # (n_out, K)
    K = offs.shape[0]

    tau = base * (j.astype(np.float64) / orig - m[:, None] / new)
    tau = np.clip(tau, -lowpass_filter_width, lowpass_filter_width)
    window = np.cos(np.pi * tau / (2.0 * lowpass_filter_width)) ** 2
    pt = np.pi * tau
    sinc = np.where(pt == 0.0, 1.0, np.sin(pt) / np.where(pt == 0.0, 1.0, pt))
    w = (window * sinc * (base / orig)).astype(np.float32)       # (n_out, K)

    if n_pad > n_out:                                            # lane-align n_out
        j = np.pad(j, ((0, n_pad - n_out), (0, 0)), mode="edge")
        w = np.pad(w, ((0, n_pad - n_out), (0, 0)))
    jT = (j + width).T                                           # (K, n_pad)
    wT = jnp.asarray(np.ascontiguousarray(w.T))                  # (K, n_pad)

    xp = jnp.pad(x, ((0, 0), (width, width)))
    xg = xp[:, jT]                                               # (B, K, n_pad)
    # TODO(synk): scalar-prefetch per-tile j0 and DMA a contiguous input slab,
    # forming the K tap-shifted views in VMEM, instead of this K-fold gather
    # (gcd(orig,new) is typically 1 for pitch-shift rates, so no polyphase).

    out = pl.pallas_call(
        _resample_kernel,
        grid=(n_blocks,),
        in_specs=[pl.BlockSpec((B, K, tile), lambda i: (0, 0, i)),
                  pl.BlockSpec((K, tile), lambda i: (0, i))],
        out_specs=pl.BlockSpec((B, tile), lambda i: (0, i)),
        out_shape=jax.ShapeDtypeStruct((B, n_pad), jnp.float32),
        compiler_params=_cp(("parallel",)),
    )(xg, wT)
    return out[:, :n_out]


# ----------------------------------------------------------------------------
# Module
# ----------------------------------------------------------------------------
class PitchShiftPallas:
    def __init__(self, sample_rate, n_steps=4, bins_per_octave=12,
                 n_fft=400, win_length=None, hop_length=None):
        if bins_per_octave < 1:
            raise ValueError("bins_per_octave must be a positive integer.")
        self.sample_rate = sample_rate
        self.n_fft = n_fft
        self.win_length = win_length if win_length else n_fft
        self.hop_length = hop_length if hop_length else self.win_length // 2
        self.rate = 2.0 ** (-float(n_steps) / bins_per_octave)
        self.n_freq = n_fft // 2 + 1

        # torch.hann_window(win_length) (periodic), centred / zero-padded to n_fft
        N = self.win_length
        hann = 0.5 - 0.5 * np.cos(2.0 * np.pi * np.arange(N) / N)
        lp = (n_fft - N) // 2
        self.window = np.pad(hann, (lp, n_fft - N - lp)).astype(np.float64)

        # TODO(synk): torchaudio's Resample takes a float orig_freq here; we round
        # to the nearest integer rate before the gcd reduction (sub-rate drift).
        self.orig_freq = int(round(sample_rate / self.rate))
        self.new_freq = int(sample_rate)

        self._forward = jax.jit(self._forward_impl)

    def _forward_impl(self, x):
        T = x.shape[-1]
        angle, norm, n_freq, nfp = spectrogram_polar(
            x, self.n_fft, self.hop_length, self.window)
        frames, win = stretch_and_synthesize(
            angle, norm, self.rate, self.hop_length,
            self.n_fft, self.win_length, n_freq, nfp)
        y = overlap_add(frames, win, self.n_fft, self.hop_length)
        y = resample(y, self.orig_freq, self.new_freq)

        Ty = y.shape[-1]
        if T < Ty:
            y = y[:, :T]
        else:
            y = jnp.pad(y, ((0, 0), (0, T - Ty)))
        return y

    def __call__(self, waveform):
        # layout: waveform (..., time) float32 -> flattened to (batch, time)
        orig_shape = waveform.shape
        T = orig_shape[-1]
        x = waveform.reshape(-1, T).astype(jnp.float32)
        y = self._forward(x)
        return y.reshape(orig_shape)


# ----------------------------------------------------------------------------
if __name__ == "__main__":
    key = jax.random.PRNGKey(0)
    B, T = 2, 1024
    waveform = jax.random.normal(key, (B, T), dtype=jnp.float32)

    ps = PitchShiftPallas(sample_rate=16000, n_steps=4, bins_per_octave=12,
                          n_fft=64, win_length=64, hop_length=32)
    out = ps(waveform)
    out = jax.block_until_ready(out)

    assert out.shape == waveform.shape, (out.shape, waveform.shape)
    assert out.dtype == jnp.float32
    assert bool(jnp.all(jnp.isfinite(out)))
    print("KERNEL_OK")
</pallas_src>

<mosaic_0001>
module attributes {stable_mosaic.version = 11 : i64} {
  func.func @_stft_polar_kernel(%arg0: i32, %arg1: memref<40x64xf32, #tpu.memory_space<vmem>>, %arg2: memref<64x256xbf16, #tpu.memory_space<vmem>>, %arg3: memref<40x128xf32, #tpu.memory_space<vmem>>, %arg4: memref<40x128xf32, #tpu.memory_space<vmem>>) attributes {dimension_semantics = [#tpu.dimension_semantics<parallel>], iteration_bounds = array<i64: 2>, scalar_prefetch = 0 : i64, scratch_operands = 0 : i64, tpu.core_type = #tpu.core_type<tc>, window_params = [{transform_indices = @transform_0, window_bounds = array<i64: 40, 64>}, {pipeline_mode = #tpu.pipeline_mode<synchronous>, transform_indices = @transform_1, window_bounds = array<i64: 64, 256>}, {transform_indices = @transform_2, window_bounds = array<i64: 40, 128>}, {transform_indices = @transform_3, window_bounds = array<i64: 40, 128>}]} {
    %c0 = arith.constant 0 : index
    %c0_0 = arith.constant 0 : index
    %0 = vector.load %arg1[%c0, %c0_0] : memref<40x64xf32, #tpu.memory_space<vmem>>, vector<40x64xf32>
    %1 = arith.truncf %0 : vector<40x64xf32> to vector<40x64xbf16>
    %c0_1 = arith.constant 0 : index
    %c0_2 = arith.constant 0 : index
    %2 = vector.load %arg2[%c0_1, %c0_2] : memref<64x256xbf16, #tpu.memory_space<vmem>>, vector<64x256xbf16>
    %cst = arith.constant dense<0.000000e+00> : vector<40x256xf32>
    %3 = tpu.matmul %1, %2, %cst {dimension_numbers = #tpu.dot_dimension_numbers<[1], [0], [0], [1], [0, 0, 1, 1], [], []>} : vector<40x64xbf16>, vector<64x256xbf16>, vector<40x256xf32> -> vector<40x256xf32>
    %4 = vector.extract_strided_slice %3 {offsets = [0, 0], sizes = [40, 128], strides = [1, 1]} : vector<40x256xf32> to vector<40x128xf32>
    %5 = vector.extract_strided_slice %3 {offsets = [0, 128], sizes = [40, 128], strides = [1, 1]} : vector<40x256xf32> to vector<40x128xf32>
    %6 = math.atan2 %5, %4 : vector<40x128xf32>
    %c0_3 = arith.constant 0 : index
    %c0_4 = arith.constant 0 : index
    %7 = vector.load %arg3[%c0_3, %c0_4] : memref<40x128xf32, #tpu.memory_space<vmem>>, vector<40x128xf32>
    tpu.vector_store %arg3[%c0_3, %c0_4], %6 {strides = array<i32>} : memref<40x128xf32, #tpu.memory_space<vmem>>, vector<40x128xf32>,
    %8 = arith.mulf %4, %4 : vector<40x128xf32>
    %9 = arith.mulf %5, %5 : vector<40x128xf32>
    %10 = arith.addf %8, %9 : vector<40x128xf32>
    %11 = math.sqrt %10 : vector<40x128xf32>
    %c0_5 = arith.constant 0 : index
    %c0_6 = arith.constant 0 : index
    %12 = vector.load %arg4[%c0_5, %c0_6] : memref<40x128xf32, #tpu.memory_space<vmem>>, vector<40x128xf32>
    tpu.vector_store %arg4[%c0_5, %c0_6], %11 {strides = array<i32>} : memref<40x128xf32, #tpu.memory_space<vmem>>, vector<40x128xf32>,
    return
  }
  func.func @transform_0(%arg0: i32) -> (i32, i32) {
    %c0_i32 = arith.constant 0 : i32
    %c0_i32_0 = arith.constant 0 : i32
    return %arg0, %c0_i32 : i32, i32
  }
  func.func @transform_1(%arg0: i32) -> (i32, i32) {
    %c0_i32 = arith.constant 0 : i32
    %c0_i32_0 = arith.constant 0 : i32
    %c0_i32_1 = arith.constant 0 : i32
    return %c0_i32, %c0_i32_0 : i32, i32
  }
  func.func @transform_2(%arg0: i32) -> (i32, i32) {
    %c0_i32 = arith.constant 0 : i32
    %c0_i32_0 = arith.constant 0 : i32
    return %arg0, %c0_i32 : i32, i32
  }
  func.func @transform_3(%arg0: i32) -> (i32, i32) {
    %c0_i32 = arith.constant 0 : i32
    %c0_i32_0 = arith.constant 0 : i32
    return %arg0, %c0_i32 : i32, i32
  }
}

module attributes {stable_mosaic.version = 11 : i64} {
  func.func @_pv_idft_kernel(%arg0: i32, %arg1: i32, %arg2: memref<1x24x128xf32, #tpu.memory_space<vmem>>, %arg3: memref<1x24x128xf32, #tpu.memory_space<vmem>>, %arg4: memref<1x24x128xf32, #tpu.memory_space<vmem>>, %arg5: memref<1x24x128xf32, #tpu.memory_space<vmem>>, %arg6: memref<1x24x1xf32, #tpu.memory_space<vmem>>, %arg7: memref<1x1x128xf32, #tpu.memory_space<vmem>>, %arg8: memref<1x1x128xf32, #tpu.memory_space<vmem>>, %arg9: memref<24x24xf32, #tpu.memory_space<vmem>>, %arg10: memref<128x128xbf16, #tpu.memory_space<vmem>>, %arg11: memref<128x128xbf16, #tpu.memory_space<vmem>>, %arg12: memref<1x24x128xf32, #tpu.memory_space<vmem>>, %arg13: memref<1x128xf32, #tpu.memory_space<vmem>>) attributes {dimension_semantics = [#tpu.dimension_semantics<parallel>, #tpu.dimension_semantics<arbitrary>], iteration_bounds = array<i64: 2, 2>, scalar_prefetch = 0 : i64, scratch_operands = 1 : i64, tpu.core_type = #tpu.core_type<tc>, window_params = [{transform_indices = @transform_0, window_bounds = array<i64: 1, 24, 128>}, {transform_indices = @transform_1, window_bounds = array<i64: 1, 24, 128>}, {transform_indices = @transform_2, window_bounds = array<i64: 1, 24, 128>}, {transform_indices = @transform_3, window_bounds = array<i64: 1, 24, 128>}, {transform_indices = @transform_4, window_bounds = array<i64: 1, 24, 1>}, {pipeline_mode = #tpu.pipeline_mode<synchronous>, transform_indices = @transform_5, window_bounds = array<i64: 1, 1, 128>}, {transform_indices = @transform_6, window_bounds = array<i64: 1, 1, 128>}, {pipeline_mode = #tpu.pipeline_mode<synchronous>, transform_indices = @transform_7, window_bounds = array<i64: 24, 24>}, {pipeline_mode = #tpu.pipeline_mode<synchronous>, transform_indices = @transform_8, window_bounds = array<i64: 128, 128>}, {pipeline_mode = #tpu.pipeline_mode<synchronous>, transform_indices = @transform_9, window_bounds = array<i64: 128, 128>}, {transform_indices = @transform_10, window_bounds = array<i64: 1, 24, 128>}]} {
    %c0_i32 = arith.constant 0 : i32
    %0 = arith.cmpi eq, %arg1, %c0_i32 : i32
    %1 = arith.extui %0 : i1 to i32
    %c0_i32_0 = arith.constant 0 : i32
    %2 = arith.cmpi ne, %1, %c0_i32_0 : i32
    scf.if %2 {
      %c0_36 = arith.constant 0 : index
      %c0_37 = arith.constant 0 : index
      %c0_38 = arith.constant 0 : index
      %57 = vector.load %arg8[%c0_36, %c0_37, %c0_38] : memref<1x1x128xf32, #tpu.memory_space<vmem>>, vector<1x1x128xf32>
      %58 = vector.shape_cast %57 : vector<1x1x128xf32> to vector<1x128xf32>
      %c0_39 = arith.constant 0 : index
      %c0_40 = arith.constant 0 : index
      %59 = vector.load %arg13[%c0_39, %c0_40] : memref<1x128xf32, #tpu.memory_space<vmem>>, vector<1x128xf32>
      tpu.vector_store %arg13[%c0_39, %c0_40], %58 {strides = array<i32>} : memref<1x128xf32, #tpu.memory_space<vmem>>, vector<1x128xf32>,
    } else {
    }
    %c0 = arith.constant 0 : index
    %c0_1 = arith.constant 0 : index
    %c0_2 = arith.constant 0 : index
    %3 = vector.load %arg2[%c0, %c0_1, %c0_2] : memref<1x24x128xf32, #tpu.memory_space<vmem>>, vector<1x24x128xf32>
    %4 = vector.shape_cast %3 : vector<1x24x128xf32> to vector<24x128xf32>
    %c0_3 = arith.constant 0 : index
    %c0_4 = arith.constant 0 : index
    %c0_5 = arith.constant 0 : index
    %5 = vector.load %arg3[%c0_3, %c0_4, %c0_5] : memref<1x24x128xf32, #tpu.memory_space<vmem>>, vector<1x24x128xf32>
    %6 = vector.shape_cast %5 : vector<1x24x128xf32> to vector<24x128xf32>
    %c0_6 = arith.constant 0 : index
    %c0_7 = arith.constant 0 : index
    %c0_8 = arith.constant 0 : index
    %7 = vector.load %arg4[%c0_6, %c0_7, %c0_8] : memref<1x24x128xf32, #tpu.memory_space<vmem>>, vector<1x24x128xf32>
    %8 = vector.shape_cast %7 : vector<1x24x128xf32> to vector<24x128xf32>
    %c0_9 = arith.constant 0 : index
    %c0_10 = arith.constant 0 : index
    %c0_11 = arith.constant 0 : index
    %9 = vector.load %arg5[%c0_9, %c0_10, %c0_11] : memref<1x24x128xf32, #tpu.memory_space<vmem>>, vector<1x24x128xf32>
    %10 = vector.shape_cast %9 : vector<1x24x128xf32> to vector<24x128xf32>
    %c0_12 = arith.constant 0 : index
    %c0_13 = arith.constant 0 : index
    %c0_14 = arith.constant 0 : index
    %11 = vector.load %arg6[%c0_12, %c0_13, %c0_14] : memref<1x24x1xf32, #tpu.memory_space<vmem>>, vector<1x24x1xf32>
    %12 = vector.shape_cast %11 : vector<1x24x1xf32> to vector<24x1xf32>
    %c0_15 = arith.constant 0 : index
    %c0_16 = arith.constant 0 : index
    %c0_17 = arith.constant 0 : index
    %13 = vector.load %arg7[%c0_15, %c0_16, %c0_17] : memref<1x1x128xf32, #tpu.memory_space<vmem>>, vector<1x1x128xf32>
    %14 = vector.shape_cast %13 : vector<1x1x128xf32> to vector<1x128xf32>
    %15 = arith.subf %6, %4 : vector<24x128xf32>
    %16 = vector.broadcast %14 : vector<1x128xf32> to vector<24x128xf32>
    %17 = arith.subf %15, %16 : vector<24x128xf32>
    %cst = arith.constant 0.159154937 : f32
    %18 = vector.broadcast %cst : f32 to vector<24x128xf32>
    %19 = arith.mulf %17, %18 : vector<24x128xf32>
    %20 = math.roundeven %19 : vector<24x128xf32>
    %cst_18 = arith.constant 6.28318548 : f32
    %21 = vector.broadcast %cst_18 : f32 to vector<24x128xf32>
    %22 = arith.mulf %21, %20 : vector<24x128xf32>
    %23 = arith.subf %17, %22 : vector<24x128xf32>
    %24 = vector.broadcast %14 : vector<1x128xf32> to vector<24x128xf32>
    %25 = arith.addf %23, %24 : vector<24x128xf32>
    %c0_19 = arith.constant 0 : index
    %c0_20 = arith.constant 0 : index
    %26 = vector.load %arg9[%c0_19, %c0_20] : memref<24x24xf32, #tpu.memory_space<vmem>>, vector<24x24xf32>
    %cst_21 = arith.constant dense<0.000000e+00> : vector<24x128xf32>
    %27 = tpu.matmul %26, %25, %cst_21 {dimension_numbers = #tpu.dot_dimension_numbers<[1], [0], [0], [1], [0, 0, 1, 1], [], []>} : vector<24x24xf32>, vector<24x128xf32>, vector<24x128xf32> -> vector<24x128xf32>
    %c0_22 = arith.constant 0 : index
    %c0_23 = arith.constant 0 : index
    %28 = vector.load %arg13[%c0_22, %c0_23] : memref<1x128xf32, #tpu.memory_space<vmem>>, vector<1x128xf32>
    %29 = vector.broadcast %28 : vector<1x128xf32> to vector<24x128xf32>
    %30 = arith.addf %29, %27 : vector<24x128xf32>
    %31 = vector.extract_strided_slice %27 {offsets = [23, 0], sizes = [1, 128], strides = [1, 1]} : vector<24x128xf32> to vector<1x128xf32>
    %32 = arith.addf %28, %31 : vector<1x128xf32>
    %33 = vector.extract_strided_slice %25 {offsets = [23, 0], sizes = [1, 128], strides = [1, 1]} : vector<24x128xf32> to vector<1x128xf32>
    %34 = arith.addf %32, %33 : vector<1x128xf32>
    %c0_24 = arith.constant 0 : index
    %c0_25 = arith.constant 0 : index
    %35 = vector.load %arg13[%c0_24, %c0_25] : memref<1x128xf32, #tpu.memory_space<vmem>>, vector<1x128xf32>
    tpu.vector_store %arg13[%c0_24, %c0_25], %34 {strides = array<i32>} : memref<1x128xf32, #tpu.memory_space<vmem>>, vector<1x128xf32>,
    %36 = vector.broadcast %12 : vector<24x1xf32> to vector<24x128xf32>
    %37 = arith.mulf %36, %10 : vector<24x128xf32>
    %cst_26 = arith.constant 1.000000e+00 : f32
    %38 = vector.broadcast %cst_26 : f32 to vector<24x1xf32>
    %39 = arith.subf %38, %12 : vector<24x1xf32>
    %40 = vector.broadcast %39 : vector<24x1xf32> to vector<24x128xf32>
    %41 = arith.mulf %40, %8 : vector<24x128xf32>
    %42 = arith.addf %37, %41 : vector<24x128xf32>
    %43 = math.cos %30 : vector<24x128xf32>
    %44 = arith.mulf %42, %43 : vector<24x128xf32>
    %45 = math.sin %30 : vector<24x128xf32>
    %46 = arith.mulf %42, %45 : vector<24x128xf32>
    %47 = arith.truncf %44 : vector<24x128xf32> to vector<24x128xbf16>
    %c0_27 = arith.constant 0 : index
    %c0_28 = arith.constant 0 : index
    %48 = vector.load %arg10[%c0_27, %c0_28] : memref<128x128xbf16, #tpu.memory_space<vmem>>, vector<128x128xbf16>
    %cst_29 = arith.constant dense<0.000000e+00> : vector<24x128xf32>
    %49 = tpu.matmul %47, %48, %cst_29 {dimension_numbers = #tpu.dot_dimension_numbers<[1], [0], [0], [1], [0, 0, 1, 1], [], []>} : vector<24x128xbf16>, vector<128x128xbf16>, vector<24x128xf32> -> vector<24x128xf32>
    %50 = arith.truncf %46 : vector<24x128xf32> to vector<24x128xbf16>
    %c0_30 = arith.constant 0 : index
    %c0_31 = arith.constant 0 : index
    %51 = vector.load %arg11[%c0_30, %c0_31] : memref<128x128xbf16, #tpu.memory_space<vmem>>, vector<128x128xbf16>
    %cst_32 = arith.constant dense<0.000000e+00> : vector<24x128xf32>
    %52 = tpu.matmul %50, %51, %cst_32 {dimension_numbers = #tpu.dot_dimension_numbers<[1], [0], [0], [1], [0, 0, 1, 1], [], []>} : vector<24x128xbf16>, vector<128x128xbf16>, vector<24x128xf32> -> vector<24x128xf32>
    %53 = arith.addf %49, %52 : vector<24x128xf32>
    %c0_33 = arith.constant 0 : index
    %c0_34 = arith.constant 0 : index
    %c0_35 = arith.constant 0 : index
    %54 = vector.load %arg12[%c0_33, %c0_34, %c0_35] : memref<1x24x128xf32, #tpu.memory_space<vmem>>, vector<1x24x128xf32>
    %55 = vector.shape_cast %54 : vector<1x24x128xf32> to vector<24x128xf32>
    %56 = vector.shape_cast %53 : vector<24x128xf32> to vector<1x24x128xf32>
    tpu.vector_store %arg12[%c0_33, %c0_34, %c0_35], %56 {strides = array<i32>} : memref<1x24x128xf32, #tpu.memory_space<vmem>>, vector<1x24x128xf32>,
    return
  }
  func.func @transform_0(%arg0: i32, %arg1: i32) -> (i32, i32, i32) {
    %c0_i32 = arith.constant 0 : i32
    %c0_i32_0 = arith.constant 0 : i32
    return %arg0, %arg1, %c0_i32 : i32, i32, i32
  }
  func.func @transform_1(%arg0: i32, %arg1: i32) -> (i32, i32, i32) {
    %c0_i32 = arith.constant 0 : i32
    %c0_i32_0 = arith.constant 0 : i32
    return %arg0, %arg1, %c0_i32 : i32, i32, i32
  }
  func.func @transform_2(%arg0: i32, %arg1: i32) -> (i32, i32, i32) {
    %c0_i32 = arith.constant 0 : i32
    %c0_i32_0 = arith.constant 0 : i32
    return %arg0, %arg1, %c0_i32 : i32, i32, i32
  }
  func.func @transform_3(%arg0: i32, %arg1: i32) -> (i32, i32, i32) {
    %c0_i32 = arith.constant 0 : i32
    %c0_i32_0 = arith.constant 0 : i32
    return %arg0, %arg1, %c0_i32 : i32, i32, i32
  }
  func.func @transform_4(%arg0: i32, %arg1: i32) -> (i32, i32, i32) {
    %c0_i32 = arith.constant 0 : i32
    %c0_i32_0 = arith.constant 0 : i32
    %c0_i32_1 = arith.constant 0 : i32
    return %c0_i32, %arg1, %c0_i32_0 : i32, i32, i32
  }
  func.func @transform_5(%arg0: i32, %arg1: i32) -> (i32, i32, i32) {
    %c0_i32 = arith.constant 0 : i32
    %c0_i32_0 = arith.constant 0 : i32
    %c0_i32_1 = arith.constant 0 : i32
    %c0_i32_2 = arith.constant 0 : i32
    return %c0_i32, %c0_i32_0, %c0_i32_1 : i32, i32, i32
  }
  func.func @transform_6(%arg0: i32, %arg1: i32) -> (i32, i32, i32) {
    %c0_i32 = arith.constant 0 : i32
    %c0_i32_0 = arith.constant 0 : i32
    %c0_i32_1 = arith.constant 0 : i32
    return %arg0, %c0_i32, %c0_i32_0 : i32, i32, i32
  }
  func.func @transform_7(%arg0: i32, %arg1: i32) -> (i32, i32) {
    %c0_i32 = arith.constant 0 : i32
    %c0_i32_0 = arith.constant 0 : i32
    %c0_i32_1 = arith.constant 0 : i32
    return %c0_i32, %c0_i32_0 : i32, i32
  }
  func.func @transform_8(%arg0: i32, %arg1: i32) -> (i32, i32) {
    %c0_i32 = arith.constant 0 : i32
    %c0_i32_0 = arith.constant 0 : i32
    %c0_i32_1 = arith.constant 0 : i32
    return %c0_i32, %c0_i32_0 : i32, i32
  }
  func.func @transform_9(%arg0: i32, %arg1: i32) -> (i32, i32) {
    %c0_i32 = arith.constant 0 : i32
    %c0_i32_0 = arith.constant 0 : i32
    %c0_i32_1 = arith.constant 0 : i32
    return %c0_i32, %c0_i32_0 : i32, i32
  }
  func.func @transform_10(%arg0: i32, %arg1: i32) -> (i32, i32, i32) {
    %c0_i32 = arith.constant 0 : i32
    %c0_i32_0 = arith.constant 0 : i32
    return %arg0, %arg1, %c0_i32 : i32, i32, i32
  }
}

module attributes {stable_mosaic.version = 11 : i64} {
  func.func @_resample_kernel(%arg0: i32, %arg1: memref<2x17x640xf32, #tpu.memory_space<vmem>>, %arg2: memref<17x640xf32, #tpu.memory_space<vmem>>, %arg3: memref<2x640xf32, #tpu.memory_space<vmem>>) attributes {dimension_semantics = [#tpu.dimension_semantics<parallel>], iteration_bounds = array<i64: 2>, scalar_prefetch = 0 : i64, scratch_operands = 0 : i64, tpu.core_type = #tpu.core_type<tc>, window_params = [{transform_indices = @transform_0, window_bounds = array<i64: 2, 17, 640>}, {transform_indices = @transform_1, window_bounds = array<i64: 17, 640>}, {transform_indices = @transform_2, window_bounds = array<i64: 2, 640>}]} {
    %c0 = arith.constant 0 : index
    %c0_0 = arith.constant 0 : index
    %c0_1 = arith.constant 0 : index
    %0 = vector.load %arg1[%c0, %c0_0, %c0_1] : memref<2x17x640xf32, #tpu.memory_space<vmem>>, vector<2x17x640xf32>
    %c0_2 = arith.constant 0 : index
    %c0_3 = arith.constant 0 : index
    %1 = vector.load %arg2[%c0_2, %c0_3] : memref<17x640xf32, #tpu.memory_space<vmem>>, vector<17x640xf32>
    %2 = vector.shape_cast %1 : vector<17x640xf32> to vector<1x17x640xf32>
    %3 = vector.broadcast %2 : vector<1x17x640xf32> to vector<2x17x640xf32>
    %4 = arith.mulf %0, %3 : vector<2x17x640xf32>
    %cst = arith.constant dense<0.000000e+00> : vector<2x640xf32>
    %5 = vector.multi_reduction <add>, %4, %cst [1] : vector<2x17x640xf32> to vector<2x640xf32>
    %c0_4 = arith.constant 0 : index
    %c0_5 = arith.constant 0 : index
    %6 = vector.load %arg3[%c0_4, %c0_5] : memref<2x640xf32, #tpu.memory_space<vmem>>, vector<2x640xf32>
    tpu.vector_store %arg3[%c0_4, %c0_5], %5 {strides = array<i32>} : memref<2x640xf32, #tpu.memory_space<vmem>>, vector<2x640xf32>,
    return
  }
  func.func @transform_0(%arg0: i32) -> (i32, i32, i32) {
    %c0_i32 = arith.constant 0 : i32
    %c0_i32_0 = arith.constant 0 : i32
    %c0_i32_1 = arith.constant 0 : i32
    return %c0_i32, %c0_i32_0, %arg0 : i32, i32, i32
  }
  func.func @transform_1(%arg0: i32) -> (i32, i32) {
    %c0_i32 = arith.constant 0 : i32
    %c0_i32_0 = arith.constant 0 : i32
    return %c0_i32, %arg0 : i32, i32
  }
  func.func @transform_2(%arg0: i32) -> (i32, i32) {
    %c0_i32 = arith.constant 0 : i32
    %c0_i32_0 = arith.constant 0 : i32
    return %c0_i32, %arg0 : i32, i32
  }
}

</mosaic_0001>

<bundles_post_ra>
// kernel: _forward_impl.3
= control target key start
LH: loop header
LB: loop body
LE: loop exit
PB: predicated region body
PF: predicated region fallthrough
CT: control target
= control target key end

     0   :  { %s804_s12 = smov 0   ;;  %s1239_s0 = inlined_call_operand.vmem [shape: f32[80,64], index: 0, kind: input, shape index: {}]   ;;  %s1240_s1 = inlined_call_operand.vmem [shape: bf16[64,256], index: 1, kind: input, shape index: {}]   ;;  %s1241_s2 = inlined_call_operand.vmem [shape: f32[80,128], index: 2, kind: output, shape index: {0}]   ;;  %s1242_s3 = inlined_call_operand.vmem [shape: f32[80,128], index: 3, kind: output, shape index: {1}]  }
   0x1 LB: > { %s701_s13 = sadd.s32 4294967295, %s779_s12   ;;  %p705_p0 = scmp.ge.s32.totalorder %s779_s12, 1  ;;  %s779_s12 = sphi %s804_s12, %s14_s12  }
   0x2   : > { %p141_p1 = scmp.lt.s32.totalorder %s779_s12, 3 }
   0x4   : > { %p142_p2 = pnand %p705_p0, %p141_p1 }
   0x5   : > { %v741_v0 = vld [vmem:[%s1240_s1 + $0x4] ss:$8 sps:$4 sm:$0xff] (!%p142_p2)   ;;  %s170_s16 = smul.u32 (!%p142_p2), 5, %s701_s13  ;;  %v743_v1 = vld [vmem:[%s1240_s1] ss:$8 sps:$4 sm:$0xff] (!%p142_p2)   ;;  %v781_v2 = vmov (!%p142_p2), 0  }
   0x6   : > { %145 = sbr.rel (%p142_p2) target bundleno = 323 (0x143), region = 28  ;;  %287 = vmatprep.mubr.bf16.mxu0 (!%p142_p2), %v781_v2  ;;  %297 = vmatprep.mubr.bf16.mxu1 (!%p142_p2), %v781_v2  ;;  %v744_v3 = vld [vmem:[%s1240_s1 + $0x14] ss:$8 sps:$4 sm:$0xff] (!%p142_p2)   ;;  %v746_v4 = vld [vmem:[%s1240_s1 + $0x10] ss:$8 sps:$4 sm:$0xff] (!%p142_p2)   ;;  %vm245_vm0 = vcmask (!%p142_p2), 523264  }
   0x7   : > { %255 = vmatprep.subr.bf16.mxu0 (!%p142_p2), %v741_v0  ;;  %722 = vmatprep.subr.bf16.mxu1 (!%p142_p2), %v741_v0  ;;  %p171_p3 = scmp.lt.s32.totalorder (!%p142_p2), %s170_s16, 9  ;;  %v747_v5 = vld [vmem:[%s1240_s1 + $0x24] ss:$8 sps:$4 sm:$0xff] (!%p142_p2)   ;;  %v749_v6 = vld [vmem:[%s1240_s1 + $0x20] ss:$8 sps:$4 sm:$0xff] (!%p142_p2)  }
   0x8   : > { %256 = vmatpush1.bf16.msra.mxu0 (!%p142_p2), %v743_v1  ;;  %726 = vmatpush1.bf16.msra.mxu1 (!%p142_p2), %v743_v1  ;;  %v750_v7 = vld [vmem:[%s1240_s1 + $0x34] ss:$8 sps:$4 sm:$0xff] (!%p142_p2)   ;;  %v752_v8 = vld [vmem:[%s1240_s1 + $0x30] ss:$8 sps:$4 sm:$0xff] (!%p142_p2)  }
   0x9   : > { %257 = vmatprep.subr.bf16.mxu0 (!%p142_p2), %v744_v3  ;;  %723 = vmatprep.subr.bf16.mxu1 (!%p142_p2), %v744_v3 }
   0xc   : > { %258 = vmatpush1.bf16.msra.mxu0 (!%p142_p2), %v746_v4  ;;  %727 = vmatpush1.bf16.msra.mxu1 (!%p142_p2), %v746_v4 }
   0xd   : > { %s1267_s16 = smov (!%p171_p3, %s170_s16), 9  ;;  %259 = vmatprep.subr.bf16.mxu0 %v747_v5  ;;  %724 = vmatprep.subr.bf16.mxu1 %v747_v5 }
   0xe   : > { %s827_s25 = sshll.u32 %s1267_s16, 3 }
   0xf   : > { %s174_s30 = scalar_lea.vmem %s1239_s0, %s827_s25  ;;  %s993_s10 = scalar_lea.vmem %s1242_s3, %s827_s25 }
  0x10   : > { %v189_v9 = vld [vmem:[%s174_s30] sm:$0xff]  ;;  %260 = vmatpush1.bf16.msra.mxu0 %v749_v6  ;;  %728 = vmatpush1.bf16.msra.mxu1 %v749_v6  ;;  %v190_v10 = vld [vmem:[%s174_s30 + $0x8] sm:$0xff]  ;;  %v191_v11 = vld [vmem:[%s174_s30 + $0x10] sm:$0xff]  ;;  %s1177_s14 = scalar_lea.vmem %s1241_s2, %s827_s25 }
  0x11   : > { %v192_v12 = vld [vmem:[%s174_s30 + $0x18] sm:$0xff]  ;;  %261 = vmatprep.subr.bf16.mxu0 %v750_v7  ;;  %725 = vmatprep.subr.bf16.mxu1 %v750_v7  ;;  %v194_v13 = vpack.c.bf16 %v190_v10, %v189_v9  ;;  %v193_v15 = vld [vmem:[%s174_s30 + $0x20] sm:$0xff] }
  0x12   : > { %v195_v14 = vpack.c.bf16 %v192_v12, %v191_v11  ;;  %v196_v16 = vpack.c.bf16 %v193_v15, %v193_v15 }
  0x14   : > { %262 = vmatpush1.bf16.msra.mxu0 %v752_v8  ;;  %729 = vmatpush1.bf16.msra.mxu1 %v752_v8 }
  0x17   : > { %717 = vmatmul.mubr.msk.bf16.vlgmr.msra.gmra.mrb[0].mxu0 %vm245_vm0, %v194_v13  ;;  %718 = vmatmul.mubr.msk.bf16.vlgmr.msra.gmra.mrb[0].mxu1 %vm245_vm0, %v195_v14 }
  0x18   : > { %307 = vmatprep.mubr.bf16.mxu1 %v781_v2 }
  0x1f   : > { %719 = vmatmul.mubr.msk.bf16.gmra.mrb[4].mxu1 %vm245_vm0, %v196_v16 }
  0xea   : > { %v842_v17 = vpop.f32.mrb[0].mxu0  ;;  %v844_v18 = vpop.f32.mrb[0].mxu1 }
  0xeb   : > { %v846_v19 = vpop.f32.mrb[1].mxu0  ;;  %v848_v20 = vpop.f32.mrb[1].mxu1  ;;  %v851_v21 = vand.u32 2147483647, %v842_v17  ;;  %vm350_vm1 = vcmp.ne.f32.partialorder %v842_v17, %v842_v17  ;;  %v556_v22 = vmul.f32 %v842_v17, %v842_v17  ;;  %v862_v25 = vand.u32 2147483647, %v844_v18 }
  0xec   : > { %v857_v23 = vpop.f32.mrb[2].mxu0  ;;  %v859_v24 = vpop.f32.mrb[2].mxu1  ;;  %v865_v26 = vand.u32 2147483647, %v846_v19  ;;  %vm351_vm2 = vcmp.ne.f32.partialorder %v846_v19, %v846_v19  ;;  %vm444_vm3 = vcmp.ne.f32.partialorder %v844_v18, %v844_v18  ;;  %v561_v28 = vmul.f32 %v846_v19, %v846_v19 }
  0xed   : > { %vm871_vm4 = vmor %vm350_vm1, %vm351_vm2  ;;  %vm356_vm5 = vcmp.eq.s32.totalorder %v851_v21, inf  ;;  %v878_v29 = vpop.f32.mrb[3].mxu0  ;;  %v880_v30 = vpop.f32.mrb[3].mxu1  ;;  %v558_v33 = vmul.f32 %v844_v18, %v844_v18  ;;  %v898_v36 = vand.u32 2147483647, %v848_v20  ;;  %vm445_vm9 = vcmp.ne.f32.partialorder %v848_v20, %v848_v20 }
  0xee   : > { %v318_v31 = vmin.f32 %v851_v21, %v865_v26  ;;  %v319_v32 = vmax.f32 %v851_v21, %v865_v26  ;;  %vm340_vm6 = vcmp.gt.f32.partialorder %v865_v26, %v851_v21  ;;  %vm357_vm7 = vcmp.eq.s32.totalorder %v865_v26, inf  ;;  %vm905_vm10 = vmor %vm444_vm3, %vm445_vm9 }
  0xef   : > { %vm891_vm8 = vmand %vm356_vm5, %vm357_vm7  ;;  %v895_v35 = vadd.f32 %v561_v28, %v556_v22  ;;  %vm450_vm11 = vcmp.eq.s32.totalorder %v862_v25, inf  ;;  %v563_v38 = vmul.f32 %v848_v20, %v848_v20  ;;  %v412_v41 = vmin.f32 %v862_v25, %v898_v36 }
  0xf0   : > { %753 = vrcp.f32 %v319_v32  ;;  %v413_v42 = vmax.f32 %v862_v25, %v898_v36  ;;  %vm451_vm13 = vcmp.eq.s32.totalorder %v898_v36, inf  ;;  %v932_v47 = vand.u32 2147483647, %v857_v23 }
  0xf1   : > { %755 = vrsqrt.f32 %v895_v35  ;;  %vm924_vm14 = vmand %vm450_vm11, %vm451_vm13  ;;  %v928_v45 = vadd.f32 %v563_v38, %v558_v33  ;;  %v557_v48 = vmul.f32 %v857_v23, %v857_v23  ;;  %v937_v49 = vand.u32 2147483647, %v859_v24 }
  0xf2   : > { %v912_v39 = vpop.f32.mrb[4].mxu1  ;;  %757 = vrcp.f32 %v413_v42  ;;  %v940_v50 = vand.u32 2147483647, %v878_v29  ;;  %vm491_vm15 = vcmp.ne.f32.partialorder %v859_v24, %v859_v24  ;;  %vm397_vm0 = vcmp.ne.f32.partialorder %v857_v23, %v857_v23 }
  0xf3   : > { %v915_v40 = vpop.f32.mrb[5].mxu1  ;;  %759 = vrsqrt.f32 %v928_v45  ;;  %vm398_vm1 = vcmp.ne.f32.partialorder %v878_v29, %v878_v29  ;;  %vm403_vm2 = vcmp.eq.s32.totalorder %v932_v47, inf  ;;  %vm573_vm9 = vcmp.eq.f32.partialorder %v895_v35, inf }
  0xf4   : > { %v313_v43 = vpop.f32.mrb[6].mxu1  ;;  %v365_v51 = vmin.f32 %v932_v47, %v940_v50  ;;  %v366_v52 = vmax.f32 %v932_v47, %v940_v50  ;;  %vm955_vm5 = vmor %vm397_vm0, %vm398_vm1  ;;  %vm404_vm7 = vcmp.eq.s32.totalorder %v940_v50, inf  ;;  %v562_v56 = vmul.f32 %v878_v29, %v878_v29 }
  0xf5   : > { %v314_v46 = vpop.f32.mrb[7].mxu1  ;;  %vm961_vm11 = vmand %vm403_vm2, %vm404_vm7  ;;  %v968_v57 = vand.u32 2147483647, %v880_v30  ;;  %vm492_vm13 = vcmp.ne.f32.partialorder %v880_v30, %v880_v30  ;;  %vm497_vm0 = vcmp.eq.s32.totalorder %v937_v49, inf  ;;  %v576_v2 = vand.u32 2147483648, %v895_v35 }
  0xf6   : > { %761 = vrcp.f32 %v366_v52  ;;  %v976_v61 = vadd.f32 %v562_v56, %v557_v48  ;;  %vm985_vm1 = vmor %vm491_vm15, %vm492_vm13  ;;  %vm575_vm7 = vcmp.eq.f32.partialorder %v895_v35, 0.0  ;;  %v559_v5 = vmul.f32 %v859_v24, %v859_v24 }
  0xf7   : > { %v459_v62 = vmin.f32 %v937_v49, %v968_v57  ;;  %v460_v63 = vmax.f32 %v937_v49, %v968_v57  ;;  %vm498_vm15 = vcmp.eq.s32.totalorder %v968_v57, inf  ;;  %v564_v12 = vmul.f32 %v880_v30, %v880_v30 }
  0xf8   : > { %763 = vrsqrt.f32 %v976_v61  ;;  %vm1012_vm13 = vmand %vm497_vm0, %vm498_vm15  ;;  %v590_v15 = vand.u32 2147483648, %v928_v45  ;;  %vm589_vm0 = vcmp.eq.f32.partialorder %v928_v45, 0.0  ;;  %v1034_v28 = vand.u32 2147483647, %v912_v39 }
  0xf9   : > { %765 = vrcp.f32 %v460_v63  ;;  %v1031_v22 = vadd.f32 %v564_v12, %v559_v5  ;;  %vm538_vm15 = vcmp.ne.f32.partialorder %v912_v39, %v912_v39  ;;  %v1043_v42 = vand.u32 2147483647, %v915_v40 }
  0xfa   : > { %v754_v54 = vpop.eup %753 }
  0xfb   : > { %v756_v58 = vpop.eup %755  ;;  %v970_v59 = vmul.f32 %v754_v54, %v318_v31  ;;  %767 = vrsqrt.f32 %v1031_v22  ;;  %v506_v48 = vmin.f32 %v1034_v28, %v1043_v42  ;;  %v507_v52 = vmax.f32 %v1034_v28, %v1043_v42 }
  0xfc   : > { %v572_v60 = vmul.f32 %v756_v58, %v895_v35  ;;  %v758_v3 = vpop.eup %757  ;;  %v560_v58 = vmul.f32 %v912_v39, %v912_v39  ;;  %vm528_vm3 = vcmp.gt.f32.partialorder %v1043_v42, %v1034_v28  ;;  %vm545_vm12 = vcmp.eq.s32.totalorder %v1043_v42, inf }
  0xfd   : > { %v997_v1 = vmul.f32 %v970_v59, %v970_v59  ;;  %v760_v7 = vpop.eup %759  ;;  %v1017_v10 = vmul.f32 %v758_v3, %v412_v41  ;;  %769 = vrcp.f32 %v507_v52  ;;  %v549_v42 = vand.u32 2147483648, %v915_v40 }
  0xfe   : > { %v574_v4 = vsel %vm573_vm9, %v895_v35, %v572_v60  ;;  %v586_v11 = vmul.f32 %v760_v7, %v928_v45  ;;  %vm587_vm9 = vcmp.eq.f32.partialorder %v928_v45, inf  ;;  %v583_v7 = vand.u32 2147483648, %v976_v61 }
  0xff   : > { %v323_v8 = vmul.f32 0.002785687, %v997_v1  ;;  %v577_v9 = vsel %vm575_vm7, %v576_v2, %v574_v4  ;;  %v1025_v14 = vmul.f32 %v1017_v10, %v1017_v10  ;;  %vm580_vm7 = vcmp.eq.f32.partialorder %v976_v61, inf }
 0x100   : > { %606 = vst [vmem:[%s993_s10] sm:$0xff] %v577_v9  ;;  %v588_v16 = vsel %vm587_vm9, %v928_v45, %v586_v11  ;;  %v762_v35 = vpop.eup %761  ;;  %vm539_vm9 = vcmp.ne.f32.partialorder %v915_v40, %v915_v40 }
 0x101   : > { %v324_v13 = vadd.f32 -0.015866, %v323_v8  ;;  %v417_v32 = vmul.f32 0.002785687, %v1025_v14  ;;  %v591_v33 = vsel %vm589_vm0, %v590_v15, %v588_v16  ;;  %v1045_v43 = vmul.f32 %v762_v35, %v365_v51  ;;  %vm1057_vm2 = vmor %vm538_vm15, %vm539_vm9 }
 0x102   : > { %608 = vst [vmem:[%s993_s10 + $0x10] sm:$0xff] %v591_v33  ;;  %vm544_vm0 = vcmp.eq.s32.totalorder %v1034_v28, inf  ;;  %v764_v54 = vpop.eup %763  ;;  %vm582_vm9 = vcmp.eq.f32.partialorder %v976_v61, 0.0  ;;  %v565_v8 = vmul.f32 %v915_v40, %v915_v40 }
 0x103   : > { %v325_v31 = vmul.f32 %v324_v13, %v997_v1  ;;  %v418_v41 = vadd.f32 -0.015866, %v417_v32  ;;  %v1063_v56 = vmul.f32 %v1045_v43, %v1045_v43  ;;  %v579_v2 = vmul.f32 %v764_v54, %v976_v61  ;;  %vm1073_vm15 = vmand %vm544_vm0, %vm545_vm12  ;;  %v766_v4 = vpop.eup %765 }
 0x104   : > { %v1090_v13 = vmul.f32 %v766_v4, %v459_v62  ;;  %vm594_vm12 = vcmp.eq.f32.partialorder %v1031_v22, inf  ;;  %v597_v54 = vand.u32 2147483648, %v1031_v22 }
 0x105   : > { %v326_v38 = vadd.f32 0.04247222, %v325_v31  ;;  %v419_v46 = vmul.f32 %v418_v41, %v1025_v14  ;;  %v370_v5 = vmul.f32 0.002785687, %v1063_v56  ;;  %v581_v12 = vsel %vm580_vm7, %v976_v61, %v579_v2 }
 0x106   : > { %v584_v16 = vsel %vm582_vm9, %v583_v7, %v581_v12  ;;  %v570_v31 = vadd.f32 %v565_v8, %v560_v58  ;;  %v1095_v35 = vmul.f32 %v1090_v13, %v1090_v13  ;;  %vm596_vm7 = vcmp.eq.f32.partialorder %v1031_v22, 0.0 }
 0x107   : > { %v327_v45 = vmul.f32 %v326_v38, %v997_v1  ;;  %v420_v63 = vadd.f32 0.04247222, %v419_v46  ;;  %v371_v15 = vadd.f32 -0.015866, %v370_v5  ;;  %607 = vst [vmem:[%s993_s10 + $0x8] sm:$0xff] %v584_v16  ;;  %v768_v38 = vpop.eup %767 }
 0x108   : > { %771 = vrsqrt.f32 %v570_v31  ;;  %v464_v62 = vmul.f32 0.002785687, %v1095_v35  ;;  %v593_v46 = vmul.f32 %v768_v38, %v1031_v22  ;;  %v770_v7 = vpop.eup %769  ;;  %vm601_vm0 = vcmp.eq.f32.partialorder %v570_v31, inf }
 0x109   : > { %v328_v60 = vadd.f32 -0.074975304, %v327_v45  ;;  %v421_v11 = vmul.f32 %v420_v63, %v1025_v14  ;;  %v372_v41 = vmul.f32 %v371_v15, %v1063_v56  ;;  %v1111_v15 = vmul.f32 %v770_v7, %v506_v48 }
 0x10a   : > { %v465_v63 = vadd.f32 -0.015866, %v464_v62  ;;  %v595_v2 = vsel %vm594_vm12, %v1031_v22, %v593_v46  ;;  %vm603_vm9 = vcmp.eq.f32.partialorder %v570_v31, 0.0  ;;  %vm346_vm12 = vcmp.lt.s32.totalorder %v842_v17, 0 }
 0x10b   : > { %v329_v9 = vmul.f32 %v328_v60, %v997_v1  ;;  %v422_v33 = vadd.f32 -0.074975304, %v421_v11  ;;  %v373_v52 = vadd.f32 0.04247222, %v372_v41  ;;  %v598_v5 = vsel %vm596_vm7, %v597_v54, %v595_v2 }
 0x10c   : > { %v466_v11 = vmul.f32 %v465_v63, %v1095_v35  ;;  %609 = vst [vmem:[%s993_s10 + $0x18] sm:$0xff] %v598_v5  ;;  %v1116_v22 = vmul.f32 %v1111_v15, %v1111_v15  ;;  %vm343_vm7 = vcmp.lt.f32.partialorder %v842_v17, 0.0 }
 0x10d   : > { %v330_v32 = vadd.f32 0.1064488, %v329_v9  ;;  %v423_v45 = vmul.f32 %v422_v33, %v1025_v14  ;;  %v374_v4 = vmul.f32 %v373_v52, %v1063_v56 }
 0x10e   : > { %v467_v33 = vadd.f32 0.04247222, %v466_v11  ;;  %v511_v48 = vmul.f32 0.002785687, %v1116_v22 }
 0x10f   : > { %v331_v61 = vmul.f32 %v330_v32, %v997_v1  ;;  %v424_v60 = vadd.f32 0.1064488, %v423_v45  ;;  %v375_v12 = vadd.f32 -0.074975304, %v374_v4  ;;  %v604_v4 = vand.u32 2147483648, %v570_v31 }
 0x110   : > { %v468_v45 = vmul.f32 %v467_v33, %v1095_v35  ;;  %v512_v2 = vadd.f32 -0.015866, %v511_v48 }
 0x111   : > { %v332_v58 = vadd.f32 -0.14207031, %v331_v61  ;;  %v425_v9 = vmul.f32 %v424_v60, %v1025_v14  ;;  %v376_v38 = vmul.f32 %v375_v12, %v1063_v56 }
 0x112   : > { %v772_v62 = vpop.eup %771  ;;  %v513_v12 = vmul.f32 %v512_v2, %v1116_v22 }
 0x113   : > { %v333_v8 = vmul.f32 %v332_v58, %v997_v1  ;;  %v426_v32 = vadd.f32 -0.14207031, %v425_v9  ;;  %v377_v46 = vadd.f32 0.1064488, %v376_v38  ;;  %v469_v58 = vadd.f32 -0.074975304, %v468_v45 }
 0x114   : > { %v600_v60 = vmul.f32 %v772_v62, %v570_v31 }
 0x115   : > { %v334_v16 = vadd.f32 0.19993454, %v333_v8  ;;  %v427_v61 = vmul.f32 %v426_v32, %v1025_v14  ;;  %v378_v63 = vmul.f32 %v377_v46, %v1063_v56  ;;  %v470_v8 = vmul.f32 %v469_v58, %v1095_v35 }
 0x116   : > { %v602_v9 = vsel %vm601_vm0, %v570_v31, %v600_v60  ;;  %v782_v58 = vmov 0.0   ;;  %vm440_vm0 = vcmp.lt.s32.totalorder %v844_v18, 0 }
 0x117   : > { %v335_v41 = vmul.f32 %v334_v16, %v997_v1  ;;  %v428_v54 = vadd.f32 0.19993454, %v427_v61  ;;  %v379_v11 = vadd.f32 -0.14207031, %v378_v63  ;;  %v605_v16 = vsel %vm603_vm9, %v604_v4, %v602_v9 }
 0x118   : > { %v471_v38 = vadd.f32 0.1064488, %v470_v8  ;;  %610 = vst [vmem:[%s993_s10 + $0x20] sm:$0xff] %v605_v16  ;;  %v514_v61 = vadd.f32 0.04247222, %v513_v12  ;;  %vm437_vm9 = vcmp.lt.f32.partialorder %v844_v18, 0.0 }
 0x119   : > { %v336_v52 = vadd.f32 -0.33333147, %v335_v41  ;;  %v429_v7 = vmul.f32 %v428_v54, %v1025_v14  ;;  %v380_v41 = vmul.f32 %v379_v11, %v1063_v56  ;;  %v347_v60 = vsel %vm346_vm12, 3.1415927, %v782_v58 }
 0x11a   : > { %v472_v31 = vmul.f32 %v471_v38, %v1095_v35  ;;  %v515_v46 = vmul.f32 %v514_v61, %v1116_v22  ;;  %vm348_vm12 = vcmp.eq.f32.partialorder %v846_v19, 0.0 }
 0x11b   : > { %v337_v5 = vmul.f32 %v336_v52, %v997_v1  ;;  %v430_v33 = vadd.f32 -0.33333147, %v429_v7  ;;  %v381_v62 = vadd.f32 0.19993454, %v380_v41 }
 0x11c   : > { %v473_v54 = vadd.f32 -0.14207031, %v472_v31  ;;  %v516_v2 = vadd.f32 -0.074975304, %v515_v46  ;;  %v361_v31 = vand.u32 2147483648, %v846_v19 }
 0x11d   : > { %v338_v32 = vmul.f32 %v337_v5, %v970_v59  ;;  %v431_v45 = vmul.f32 %v430_v33, %v1025_v14  ;;  %v382_v63 = vmul.f32 %v381_v62, %v1063_v56 }
 0x11e   : > { %v474_v7 = vmul.f32 %v473_v54, %v1095_v35  ;;  %v517_v11 = vmul.f32 %v516_v2, %v1116_v22 }
 0x11f   : > { %v339_v1 = vadd.f32 %v338_v32, %v970_v59  ;;  %v432_v52 = vmul.f32 %v431_v45, %v1017_v10  ;;  %v783_v59 = vmov 0.7853982   ;;  %v383_v9 = vadd.f32 -0.33333147, %v382_v63 }
 0x120   : > { %v355_v14 = vsel %vm343_vm7, 2.3561945, %v783_v59  ;;  %v475_v16 = vadd.f32 0.19993454, %v474_v7  ;;  %v518_v26 = vadd.f32 0.1064488, %v517_v11 }
 0x121   : > { %v341_v48 = vsub.f32 1.5707964, %v339_v1  ;;  %v433_v5 = vadd.f32 %v432_v52, %v1017_v10  ;;  %v384_v21 = vmul.f32 %v383_v9, %v1063_v56  ;;  %v441_v10 = vsel %vm440_vm0, 3.1415927, %v782_v58 }
 0x122   : > { %v476_v41 = vmul.f32 %v475_v16, %v1095_v35  ;;  %v519_v45 = vmul.f32 %v518_v26, %v1116_v22  ;;  %v455_v63 = vand.u32 2147483648, %v848_v20  ;;  %vm487_vm0 = vcmp.lt.s32.totalorder %v859_v24, 0 }
 0x123   : > { %v342_v4 = vsel %vm340_vm6, %v341_v48, %v339_v1  ;;  %v435_v12 = vsub.f32 1.5707964, %v433_v5  ;;  %vm1263_vm6 = vcmp.gt.f32.partialorder %v898_v36, %v862_v25  ;;  %v385_v1 = vmul.f32 %v384_v21, %v1045_v43 }
 0x124   : > { %v344_v8 = vsub.f32 3.1415927, %v342_v4  ;;  %v477_v25 = vadd.f32 -0.33333147, %v476_v41  ;;  %v520_v46 = vadd.f32 -0.14207031, %v519_v45 }
 0x125   : > { %v436_v38 = vsel %vm1263_vm6, %v435_v12, %v433_v5  ;;  %v386_v27 = vadd.f32 %v385_v1, %v1045_v43  ;;  %v449_v48 = vsel %vm437_vm9, 2.3561945, %v783_v59  ;;  %v408_v26 = vand.u32 2147483648, %v878_v29 }
 0x126   : > { %v345_v32 = vsel %vm343_vm7, %v344_v8, %v342_v4  ;;  %v438_v17 = vsub.f32 3.1415927, %v436_v38  ;;  %vm442_vm7 = vcmp.eq.f32.partialorder %v848_v20, 0.0  ;;  %v478_v34 = vmul.f32 %v477_v25, %v1095_v35 }
 0x127   : > { %v349_v33 = vsel %vm348_vm12, %v347_v60, %v345_v32  ;;  %v388_v60 = vsub.f32 1.5707964, %v386_v27  ;;  %v521_v43 = vmul.f32 %v520_v46, %v1116_v22  ;;  %vm484_vm12 = vcmp.lt.f32.partialorder %v859_v24, 0.0 }
 0x128   : > { %v353_v61 = vsel %vm871_vm4, nan, %v349_v33  ;;  %v439_v62 = vsel %vm437_vm9, %v438_v17, %v436_v38  ;;  %v479_v2 = vmul.f32 %v478_v34, %v1090_v13  ;;  %vm393_vm4 = vcmp.lt.s32.totalorder %v857_v23, 0 }
 0x129   : > { %v359_v56 = vsel %vm891_vm8, %v355_v14, %v353_v61  ;;  %v443_v19 = vsel %vm442_vm7, %v441_v10, %v439_v62  ;;  %vm1264_vm8 = vcmp.gt.f32.partialorder %v940_v50, %v932_v47  ;;  %v522_v35 = vadd.f32 0.19993454, %v521_v43 }
 0x12a   : > { %v360_v36 = vand.u32 2147483647, %v359_v56  ;;  %v447_v54 = vsel %vm905_vm10, nan, %v443_v19  ;;  %v389_v37 = vsel %vm1264_vm8, %v388_v60, %v386_v27  ;;  %v480_v5 = vadd.f32 %v479_v2, %v1090_v13 }
 0x12b   : > { %v453_v18 = vsel %vm924_vm14, %v449_v48, %v447_v54  ;;  %v391_v4 = vsub.f32 3.1415927, %v389_v37  ;;  %vm390_vm10 = vcmp.lt.f32.partialorder %v857_v23, 0.0  ;;  %v523_v20 = vmul.f32 %v522_v35, %v1116_v22 }
 0x12c   : > { %v362_v52 = vor.u32 %v361_v31, %v360_v36  ;;  %v454_v14 = vand.u32 2147483647, %v453_v18  ;;  %v394_v44 = vsel %vm393_vm4, 3.1415927, %v782_v58  ;;  %vm395_vm14 = vcmp.eq.f32.partialorder %v878_v29, 0.0 }
 0x12d   : > { %v392_v8 = vsel %vm390_vm10, %v391_v4, %v389_v37  ;;  %v482_v9 = vsub.f32 1.5707964, %v480_v5  ;;  %v524_v12 = vadd.f32 -0.33333147, %v523_v20  ;;  %v402_v47 = vsel %vm390_vm10, 2.3561945, %v783_v59 }
 0x12e   : > { %551 = vst [vmem:[%s1177_s14] sm:$0xff] %v362_v52  ;;  %v456_v7 = vor.u32 %v455_v63, %v454_v14  ;;  %v396_v11 = vsel %vm395_vm14, %v394_v44, %v392_v8  ;;  %vm1265_vm9 = vcmp.gt.f32.partialorder %v968_v57, %v937_v49  ;;  %v488_v10 = vsel %vm487_vm0, 3.1415927, %v782_v58 }
 0x12f   : > { %v400_v50 = vsel %vm955_vm5, nan, %v396_v11  ;;  %v483_v23 = vsel %vm1265_vm9, %v482_v9, %v480_v5  ;;  %v525_v32 = vmul.f32 %v524_v12, %v1116_v22  ;;  %vm489_vm5 = vcmp.eq.f32.partialorder %v880_v30, 0.0 }
 0x130   : > { %553 = vst [vmem:[%s1177_s14 + $0x10] sm:$0xff] %v456_v7  ;;  %v406_v13 = vsel %vm961_vm11, %v402_v47, %v400_v50  ;;  %v485_v16 = vsub.f32 3.1415927, %v483_v23  ;;  %v496_v33 = vsel %vm484_vm12, 2.3561945, %v783_v59  ;;  %v502_v41 = vand.u32 2147483648, %v880_v30 }
 0x131   : > { %v407_v21 = vand.u32 2147483647, %v406_v13  ;;  %v526_v49 = vmul.f32 %v525_v32, %v1111_v15  ;;  %vm534_vm11 = vcmp.lt.s32.totalorder %v912_v39, 0 }
 0x132   : > { %v486_v53 = vsel %vm484_vm12, %v485_v16, %v483_v23 }
 0x133   : > { %v409_v57 = vor.u32 %v408_v26, %v407_v21  ;;  %v490_v55 = vsel %vm489_vm5, %v488_v10, %v486_v53  ;;  %v527_v24 = vadd.f32 %v526_v49, %v1111_v15  ;;  %v535_v15 = vsel %vm534_vm11, 3.1415927, %v782_v58 }
 0x134   : > { %v494_v22 = vsel %vm985_vm1, nan, %v490_v55  ;;  %vm531_vm1 = vcmp.lt.f32.partialorder %v912_v39, 0.0 }
 0x135   : > { %552 = vst [vmem:[%s1177_s14 + $0x8] sm:$0xff] %v409_v57  ;;  %v500_v29 = vsel %vm1012_vm13, %v496_v33, %v494_v22  ;;  %v529_v61 = vsub.f32 1.5707964, %v527_v24  ;;  %vm536_vm13 = vcmp.eq.f32.partialorder %v915_v40, 0.0  ;;  %v543_v30 = vsel %vm531_vm1, 2.3561945, %v783_v59 }
 0x136   : > { %v501_v38 = vand.u32 2147483647, %v500_v29 }
 0x137   : > { %v530_v1 = vsel %vm528_vm3, %v529_v61, %v527_v24 }
 0x138   : > { %v503_v17 = vor.u32 %v502_v41, %v501_v38  ;;  %v532_v0 = vsub.f32 3.1415927, %v530_v1 }
 0x13a   : > { %554 = vst [vmem:[%s1177_s14 + $0x18] sm:$0xff] %v503_v17  ;;  %v533_v6 = vsel %vm531_vm1, %v532_v0, %v530_v1 }
 0x13b   : > { %v537_v45 = vsel %vm536_vm13, %v535_v15, %v533_v6 }
 0x13c   : > { %v541_v56 = vsel %vm1057_vm2, nan, %v537_v45 }
 0x13d   : > { %v547_v31 = vsel %vm1073_vm15, %v543_v30, %v541_v56 }
 0x13e   : > { %v548_v28 = vand.u32 2147483647, %v547_v31 }
 0x140   : > { %v550_v25 = vor.u32 %v549_v42, %v548_v28 }
 0x142   : > { %555 = vst [vmem:[%s1177_s14 + $0x20] sm:$0xff] %v550_v25 }
 0x143 PF: > { %s14_s12 = sadd.s32 1, %s779_s12  }
 0x144   : > { %p11_p4 = scmp.ge.s32.totalorder %s14_s12, 4  }
 0x146   :  { %13 = sbr.rel (!%p11_p4) target bundleno = 1 (0x1), region = 70 }

// kernel: _forward_impl.4
= control target key start
LH: loop header
LB: loop body
LE: loop exit
PB: predicated region body
PF: predicated region fallthrough
CT: control target
= control target key end

     0   :  { %s3045_s0 = inlined_call_operand.vmem [shape: f32[2,48,128], index: 0, kind: input, shape index: {}]   ;;  %s3046_s1 = inlined_call_operand.vmem [shape: f32[2,48,128], index: 1, kind: input, shape index: {}]   ;;  %s3047_s2 = inlined_call_operand.vmem [shape: f32[2,48,128], index: 2, kind: input, shape index: {}]   ;;  %s3048_s3 = inlined_call_operand.vmem [shape: f32[2,48,128], index: 3, kind: input, shape index: {}]   ;;  %s3049_s4 = inlined_call_operand.hbm [shape: f32[1,48,1], index: 4, kind: input, shape index: {}]   ;;  %s3050_s5 = inlined_call_operand.hbm [shape: f32[1,1,128], index: 5, kind: input, shape index: {}]   ;;  %s3051_s6 = inlined_call_operand.vmem [shape: f32[2,1,128], index: 6, kind: input, shape index: {}]   ;;  %s3052_s7 = inlined_call_operand.hbm [shape: f32[24,24], index: 7, kind: input, shape index: {}]   ;;  %s3053_s8 = inlined_call_operand.hbm [shape: bf16[128,128], index: 8, kind: input, shape index: {}]   ;;  %s3054_s9 = inlined_call_operand.hbm [shape: bf16[128,128], index: 9, kind: input, shape index: {}]   ;;  %s3055_s10 = inlined_call_operand.vmem [shape: f32[2,48,128], index: 10, kind: output, shape index: {}]  }
   0x1   :  { %3065 = sst [smem:[#allocation16_spill]] %s3046_s1 }
   0x2   :  { %3066 = sst [smem:[#allocation17_spill]] %s3047_s2 }
   0x3   :  { %3067 = sst [smem:[#allocation18_spill]] %s3048_s3 }
   0x4   :  { %3068 = sst [smem:[#allocation19_spill]] %s3049_s4 }
   0x5   :  { %3069 = sst [smem:[#allocation20_spill]] %s3050_s5 }
   0x6   :  { %3070 = sst [smem:[#allocation21_spill]] %s3052_s7 }
   0x7   :  { %3071 = sst [smem:[#allocation22_spill]] %s3053_s8 }
   0x8   :  { %3072 = sst [smem:[#allocation23_spill]] %s3054_s9 }
   0x9   :  { %3073 = sst [smem:[#allocation24_spill]] %s3055_s10 }
   0xa   :  { %15 = vsyncpa [#allocation4], 0 }
   0xb   :  { %17 = vsyncpa [#allocation4 + $0x1], 0 }
   0xc   :  { %18 = vsyncpa [#allocation6], 0 }
   0xd   :  { %19 = vsyncpa [#allocation9], 0  ;;  %s2548_s13 = smov 0   ;;  %s2550_s14 = smov 0  }
   0xe   :  { %s2552_s15 = smov 0   ;;  %s2554_s16 = smov 0  }
   0xf   :  { %s2556_s17 = smov 0   ;;  %s2558_s18 = smov 0  }
  0x10   :  { %s2560_s19 = smov 0   ;;  %s2562_s20 = smov 0  }
  0x11 LB: > { %s1926_s21 = sadd.s32 4294967295, %s2471_s20   ;;  %p169_p0 = scmp.ne.s32.totalorder %s2447_s14, %s2443_s13  ;;  %s2471_s20 = sphi %s2562_s20, %s25_s20   ;;  %s2467_s19 = sphi %s2560_s19, %s3106_s19   ;;  %s2463_s18 = sphi %s2558_s18, %s3105_s18   ;;  %s2459_s17 = sphi %s2556_s17, %s3104_s17   ;;  %s2455_s16 = sphi %s2554_s16, %s3103_s16   ;;  %s2451_s15 = sphi %s2552_s15, %s3102_s15   ;;  %s2447_s14 = sphi %s2550_s14, %s3101_s14   ;;  %s2443_s13 = sphi %s2548_s13, %s3100_s13  }
  0x12   : > { %p2588_p1 = scmp.eq.s32.totalorder %s1926_s21, 0  ;;  %p1928_p2 = scmp.ge.s32.totalorder %s2471_s20, 1 }
  0x13   : > { %p318_p3 = scmp.lt.s32.totalorder %s2471_s20, 5  ;;  %s2473_s25 = smov [#allocation5]  }
  0x14   : > { %s3074_s22 = scalar_select %p2588_p1, 1, 0 }
  0x15   : > { %p2596_p4 = por %p2588_p1, %p169_p0  ;;  %p2600_p5 = pnand %p1928_p2, %p318_p3 }
  0x16   : > { %s331_s26 = sshll.u32 %s2473_s25, 4  ;;  %s2474_s27 = smov [#allocation8]   ;;  %s332_s26 = int_to_ptr.vmem [resolvable:$true] %s331_s26 }
  0x17   : > { %s3075_s23 = scalar_select %p2596_p4, 1, 0 }
  0x18   : > { %s3076_s24 = scalar_select %p2600_p5, 1, 0 }
  0x19   : > { %p2116_p6 = pneg %p2600_p5  ;;  %s354_s28 = sshll.u32 %s2474_s27, 4  ;;  %s2612_s28 = int_to_ptr.vmem [resolvable:$true] %s354_s28 }
  0x1a   : > { %s2475_s30 = smov [#allocation7]   ;;  %s3078_s5 = sld [smem:[#allocation20_spill]] }
  0x1b   : > { %p2608_p7 = pnand %p2116_p6, %p2588_p1  ;;  %s2614_s11 = sshll.u32 %s2475_s30, 4  ;;  %s342_s11 = int_to_ptr.vmem [resolvable:$true] %s2614_s11 }
  0x1d   : > { %p2624_p9 = pneg %p2608_p7 }
  0x20   : > { %s2255_s21 = scalar_lea.hbm %s3078_s5, 16 }
  0x21   : > { %p2256_p8 = scmp.ne.s32.totalorder %s3078_s5, %s2255_s21  ;;  %p2262_p12 = scmp.lt.u32.totalorder %s2255_s21, %s3078_s5 }
  0x23   : > { %p2258_p10 = pnand %p2624_p9, %p2256_p8 }
  0x25   : > { %p2259_p11 = pneg %p2258_p10 }
  0x27   : > { %p2264_p13 = pnand %p2262_p12, %p2259_p11 }
  0x29   : > { %2267 = shalt.err (!%p2264_p13)
}
  0x2a   : > { %s2268_s12 = scalar_lea.vmem %s332_s26, 16  ;;  %s2275_s10 = scalar_lea.vmem %s332_s26, 32 }
  0x2b   : > { %p2269_p0 = scmp.ne.s32.totalorder %s332_s26, %s2268_s12  ;;  %p2276_p6 = scmp.lt.s32.totalorder %s332_s26, %s332_s26 }
  0x2c   : > { %p2277_p1 = scmp.lt.s32.totalorder %s2275_s10, %s2268_s12 }
  0x2d   : > { %p2271_p2 = pnand %p2269_p0, %p2624_p9 }
  0x2e   : > { %p2278_p4 = por %p2277_p1, %p2276_p6 }
  0x2f   : > { %p2272_p3 = pneg %p2271_p2 }
  0x31   : > { %p2279_p5 = pnand %p2278_p4, %p2272_p3 }
  0x33   : > { %2282 = shalt.err (!%p2279_p5)
}
  0x34   : > { %2119 = dma.hbm_to_vmem [thread:$0]  (!%p2608_p7), %s3078_s5, 16, %s332_s26, [#allocation6]  }
  0x35   : > { %s3080_s8 = sld [smem:[#allocation22_spill]] }
  0x3b   : > { %s2283_s30 = scalar_lea.hbm %s3080_s8, 1024 }
  0x3c   : > { %p2284_p8 = scmp.ne.s32.totalorder %s3080_s8, %s2283_s30  ;;  %p2290_p4 = scmp.lt.u32.totalorder %s2283_s30, %s3080_s8 }
  0x3e   : > { %p2286_p10 = pnand %p2284_p8, %p2624_p9 }
  0x40   : > { %p2287_p1 = pneg %p2286_p10 }
  0x42   : > { %p2292_p5 = pnand %p2290_p4, %p2287_p1 }
  0x44   : > { %2295 = shalt.err (!%p2292_p5)
}
  0x45   : > { %s2296_s26 = scalar_lea.vmem %s2612_s28, 1024  ;;  %p2304_p0 = scmp.lt.s32.totalorder %s2612_s28, %s2612_s28 }
  0x46   : > { %p2297_p11 = scmp.ne.s32.totalorder %s2612_s28, %s2296_s26  ;;  %p2305_p2 = scmp.lt.s32.totalorder %s2296_s26, %s2296_s26 }
  0x48   : > { %p2299_p12 = pnand %p2297_p11, %p2624_p9  ;;  %p2306_p3 = por %p2305_p2, %p2304_p0 }
  0x4a   : > { %p2300_p13 = pneg %p2299_p12 }
  0x4c   : > { %p2307_p6 = pnand %p2306_p3, %p2300_p13 }
  0x4e   : > { %2310 = shalt.err (!%p2307_p6)
}
  0x4f   : > { %s3060_s1 = smov 64   ;;  %s3061_s2 = smov 4  }
  0x50   : > { %2125 = dma.hbm_to_vmem [thread:$0]  (!%p2608_p7), %s3080_s8, 1024, %s2612_s28, [#allocation9], %s3060_s1, %s3060_s1, %s3061_s2  }
  0x51   : > { %s3081_s7 = sld [smem:[#allocation21_spill]] }
  0x57   : > { %s2311_s30 = scalar_lea.hbm %s3081_s7, 384 }
  0x58   : > { %p2312_p8 = scmp.ne.s32.totalorder %s3081_s7, %s2311_s30  ;;  %p2318_p4 = scmp.lt.u32.totalorder %s2311_s30, %s3081_s7 }
  0x5a   : > { %p2314_p10 = pnand %p2312_p8, %p2624_p9 }
  0x5c   : > { %p2315_p1 = pneg %p2314_p10 }
  0x5e   : > { %p2320_p5 = pnand %p2318_p4, %p2315_p1 }
  0x60   : > { %2323 = shalt.err (!%p2320_p5)
}
  0x61   : > { %s2324_s13 = scalar_lea.vmem %s342_s11, 384  ;;  %p2332_p0 = scmp.lt.s32.totalorder %s342_s11, %s342_s11 }
  0x62   : > { %p2325_p11 = scmp.ne.s32.totalorder %s342_s11, %s2324_s13  ;;  %p2333_p2 = scmp.lt.s32.totalorder %s2324_s13, %s2324_s13 }
  0x64   : > { %p2327_p12 = pnand %p2325_p11, %p2624_p9  ;;  %p2334_p3 = por %p2333_p2, %p2332_p0 }
  0x66   : > { %p2328_p13 = pneg %p2327_p12 }
  0x68   : > { %p2335_p6 = pnand %p2334_p3, %p2328_p13 }
  0x6a   : > { %2338 = shalt.err (!%p2335_p6)
}
  0x6b   : > { %s3062_s28 = smov 128   ;;  %s3063_s25 = smov 8  }
  0x6c   : > { %2122 = dma.hbm_to_vmem [thread:$0]  (!%p2608_p7), %s3081_s7, 384, %s342_s11, [#allocation6], %s3062_s28, %s3062_s28, %s3063_s25  }
  0x6d   : > { %s2480_s21 = smov [#allocation10]   ;;  %s3082_s9 = sld [smem:[#allocation23_spill]] }
  0x6e   : > { %s367_s30 = sshll.u32 %s2480_s21, 4  ;;  %s368_s30 = int_to_ptr.vmem [resolvable:$true] %s367_s30 }
  0x73   : > { %s2339_s26 = scalar_lea.hbm %s3082_s9, 1024 }
  0x74   : > { %p2340_p8 = scmp.ne.s32.totalorder %s3082_s9, %s2339_s26  ;;  %p2346_p4 = scmp.lt.u32.totalorder %s2339_s26, %s3082_s9 }
  0x76   : > { %p2342_p10 = pnand %p2340_p8, %p2624_p9 }
  0x78   : > { %p2343_p1 = pneg %p2342_p10 }
  0x7a   : > { %p2348_p5 = pnand %p2346_p4, %p2343_p1 }
  0x7c   : > { %2351 = shalt.err (!%p2348_p5)
}
  0x7d   : > { %s2352_s11 = scalar_lea.vmem %s368_s30, 1024  ;;  %p2360_p0 = scmp.lt.s32.totalorder %s368_s30, %s368_s30 }
  0x7e   : > { %p2353_p11 = scmp.ne.s32.totalorder %s368_s30, %s2352_s11  ;;  %p2361_p2 = scmp.lt.s32.totalorder %s2352_s11, %s2352_s11 }
  0x80   : > { %p2355_p12 = pnand %p2353_p11, %p2624_p9  ;;  %p2362_p3 = por %p2361_p2, %p2360_p0 }
  0x82   : > { %p2356_p13 = pneg %p2355_p12 }
  0x84   : > { %p2363_p6 = pnand %p2362_p3, %p2356_p13 }
  0x86   : > { %2366 = shalt.err (!%p2363_p6)
}
  0x87   : > { %s3083_s1 = smov 4   ;;  %s3084_s5 = smov 64  }
  0x88   : > { %2128 = dma.hbm_to_vmem [thread:$0]  (!%p2608_p7), %s3082_s9, 1024, %s368_s30, [#allocation9], %s3084_s5, %s3084_s5, %s3083_s1  }
  0x89   : > { %s34_s27 = sadd.s32 1, %s2463_s18  ;;  %s37_s29 = sadd.s32 1, %s2467_s19 }
  0x8a   : > { %p35_p9 = scmp.ge.s32.totalorder %s34_s27, 2  ;;  %s156_s3 = sadd.s32 1, %s2451_s15 }
  0x8b   : > { %p163_p8 = scmp.ne.s32.totalorder %s2451_s15, %s2447_s14  ;;  %p164_p10 = scmp.eq.s32.totalorder %s2471_s20, 0 }
  0x8c   : > { %s3108_s27 = smov (%p35_p9, %s34_s27), 0  ;;  %s3110_s29 = smov (!%p35_p9, %s37_s29), %s2467_s19 }
  0x8d   : > { %3085 = sst [smem:[#allocation14_spill]] %s3108_s27  ;;  %s153_s21 = ssub.s32 %s2463_s18, %s3108_s27 }
  0x8e   : > { %p165_p1 = por %p164_p10, %p163_p8  ;;  %p39_p4 = scmp.ge.s32.totalorder %s3110_s29, 2 }
  0x8f   : > { %p154_p5 = scmp.eq.s32.totalorder %s153_s21, 0  ;;  %p2137_p11 = scmp.lt.s32.totalorder %s2471_s20, 4 }
  0x90   : > { %s433_s12 = sand.u32 1, %s2451_s15   ;;  %s3112_s29 = smov (%p39_p4, %s3110_s29), 0 }
  0x91   : > { %3086 = sst [smem:[#allocation15_spill]] %s3112_s29  ;;  %s2080_s10 = smul.u32 24, %s433_s12 }
  0x92   : > { %s2725_s30 = scalar_select %p154_p5, %s2451_s15, %s156_s3  }
  0x93   : > { %s1992_s26 = smul.u32 384, %s2463_s18  ;;  %p2728_p7 = pnand %p2137_p11, %p165_p1 }
  0x94   : > { %s3088_s4 = sld [smem:[#allocation19_spill]]  ;;  %s437_s8 = scalar_lea.vmem [#allocation3], %s2080_s10 }
  0x95   : > { %s444_s2 = sshll.u32 %s437_s8, 4  ;;  %s2739_s3 = scalar_lea.sflag [#allocation4], %s433_s12  ;;  %s2737_s2 = int_to_ptr.vmem [resolvable:$true] %s444_s2 }
  0x96   : > { %p2369_p13 = pneg %p2728_p7 }
  0x9a   : > { %s2735_s5 = scalar_lea.hbm %s3088_s4, %s1992_s26  ;;  %s2372_s1 = scalar_lea.hbm %s3088_s4, 768 }
  0x9b   : > { %s2367_s21 = scalar_lea.hbm %s2735_s5, 384  ;;  %p2373_p3 = scmp.lt.u32.totalorder %s2735_s5, %s3088_s4 }
  0x9c   : > { %p2368_p12 = scmp.ne.s32.totalorder %s2735_s5, %s2367_s21  ;;  %p2374_p6 = scmp.lt.u32.totalorder %s2372_s1, %s2367_s21 }
  0x9d   : > { %p2376_p8 = scmp.lt.u32.totalorder %s2367_s21, %s2735_s5 }
  0x9e   : > { %p2370_p0 = pnand %p2369_p13, %p2368_p12  ;;  %p2375_p9 = por %p2374_p6, %p2373_p3 }
  0xa0   : > { %p2371_p2 = pneg %p2370_p0  ;;  %p2377_p10 = por %p2376_p8, %p2375_p9 }
  0xa2   : > { %p2378_p1 = pnand %p2377_p10, %p2371_p2 }
  0xa4   : > { %2381 = shalt.err (!%p2378_p1)
}
  0xa5   : > { %s2382_s12 = scalar_lea.vmem %s2737_s2, 384  ;;  %s2481_s10 = smov [#allocation3]  }
  0xa6   : > { %p2383_p4 = scmp.ne.s32.totalorder %s2737_s2, %s2382_s12  ;;  %s2387_s8 = sshll.u32 %s2481_s10, 4  ;;  %s2388_s8 = int_to_ptr.vmem [resolvable:$false] %s2387_s8 }
  0xa7   : > { %s2389_s28 = scalar_lea.vmem %s2388_s8, 768  ;;  %p2390_p12 = scmp.lt.s32.totalorder %s2737_s2, %s2388_s8 }
  0xa8   : > { %p2385_p5 = pnand %p2383_p4, %p2369_p13  ;;  %p2391_p0 = scmp.lt.s32.totalorder %s2389_s28, %s2382_s12 }
  0xaa   : > { %p2386_p11 = pneg %p2385_p5  ;;  %p2392_p3 = por %p2391_p0, %p2390_p12 }
  0xac   : > { %p2393_p6 = pnand %p2392_p3, %p2386_p11 }
  0xae   : > { %2396 = shalt.err (!%p2393_p6)
}
  0xaf   : > { %s3089_s25 = smov 8   ;;  %s3090_s21 = smov 128  }
  0xb0   : > { %2132 = dma.hbm_to_vmem [thread:$0]  (!%p2728_p7), %s2735_s5, 384, %s2737_s2, %s2739_s3, %s3090_s21, %s3090_s21, %s3089_s25  }
  0xb1   : > { %p3091_p13 = scmp.ne.s32.totalorder %s3076_s24, 0 }
  0xb2   : > { %s464_s26 = sand.u32 (!%p3091_p13), 1, %s2447_s14   ;;  %p3092_p2 = scmp.ne.s32.totalorder (!%p3091_p13), %s3075_s23, 0 }
  0xb3   : > { %462 = sbr.rel (%p3091_p13) target bundleno = 780 (0x30c), region = 60  ;;  %s465_s1 = scalar_lea.sflag (!%p3091_p13), [#allocation4], %s464_s26 }
  0xb4   : > { %s2081_s11 = smul.u32 (!%p3091_p13), 24, %s464_s26 }
  0xb6   : > { %s2773_s12 = scalar_lea.vmem (!%p3091_p13), [#allocation3], %s2081_s11 }
  0xba   : > { %2430 = dma.done.wait (%p3092_p2), %s465_s1, 384  }
  0xbb   : > { %2432 = vsyncadd (%p3092_p2), %s465_s1, 4294966912  ;;  %p3093_p9 = scmp.ne.s32.totalorder %s3074_s22, 0 }
  0xbd   : > { %2434 = dma.done.wait (%p3093_p9), [#allocation6], 400  }
  0xbe   : > { %2436 = vsyncadd (%p3093_p9), [#allocation6], 4294966896 }
  0xbf   : > { %2438 = dma.done.wait (%p3093_p9), [#allocation9], 2048  }
  0xc0   : > { %2440 = vsyncadd (%p3093_p9), [#allocation9], 4294965248  ;;  %s564_s24 = smul.u32 3, %s2455_s16  ;;  %p565_p7 = scmp.lt.s32.totalorder %s2459_s17, 1 }
  0xc1   : > { %s3094_s26 = sld [smem:[#allocation16_spill]]  ;;  %s3095_s7 = sld [smem:[#allocation17_spill]] }
  0xc2   : > { %s3114_s17 = smov (!%p565_p7, %s2459_s17), 1  ;;  %p567_p8 = scmp.lt.s32.totalorder %s564_s24, 5 }
  0xc3   : > { %s2082_s23 = smul.u32 6, %s3114_s17  ;;  %s607_s2 = scalar_lea.vmem %s3051_s6, %s3114_s17 }
  0xc4   : > { %s3116_s24 = smov (!%p567_p8, %s564_s24), 5  ;;  %s3096_s13 = sld [smem:[#allocation18_spill]] }
  0xc5   : > { %s570_s3 = sadd.s32 %s2082_s23, %s3116_s24  ;;  %s3097_s5 = sld [smem:[#allocation24_spill]] }
  0xc6   : > { %s1940_s10 = sshll.u32 %s570_s3, 3  ;;  %p1945_p10 = scmp.ne.s32.totalorder %s2455_s16, 0 }
  0xc7   : > { %s572_s22 = scalar_lea.vmem %s3045_s0, %s1940_s10  ;;  %s582_s11 = scalar_lea.vmem %s3094_s26, %s1940_s10  ;;  %v623_v0 = vld [vmem:[%s607_s2] sm:$0x1] (!%p1945_p10) }
  0xc8   : > { %s2802_s9 = scalar_lea.vmem %s3095_s7, %s1940_s10  ;;  %622 = sbr.rel (%p1945_p10) target bundleno = 207 (0xcf), region = 84  ;;  %624 = vst [vmem:[#allocation2] sm:$0x1] (!%p1945_p10), %v623_v0 }
  0xca   : > { %s2807_s17 = scalar_lea.vmem %s3096_s13, %s1940_s10 }
  0xcb   : > { %s2812_s3 = scalar_lea.vmem %s3097_s5, %s1940_s10 }
  0xcf PF: > { %v625_v1 = vld [vmem:[%s572_s22] sm:$0xff]  ;;  %v626_v2 = vld [vmem:[%s572_s22 + $0x8] sm:$0xff]  ;;  %v2482_v4 = vmov 0.0|0.0   ;;  %v1946_v6 = vld [vmem:[#allocation5] ss:$0 sm:$0xff]  ;;  %vm2483_vm0 = vmmov 0   ;;  %v763_v52 = vlaneseq }
  0xd0   : > { %v628_v3 = vld [vmem:[%s582_s11] sm:$0xff]  ;;  %2074 = vmatprep.subr.bf16.mxu0 %v2482_v4  ;;  %v629_v5 = vld [vmem:[%s582_s11 + $0x8] sm:$0xff]  ;;  %v627_v8 = vld [vmem:[%s572_s22 + $0x10] sm:$0xff]  ;;  %v2484_v9 = vmov 0.0   ;;  %v2485_v17 = vmov 0   ;;  %vm671_vm1 = vcmask 195584  }
  0xd1   : > { %v641_v7 = vsub.f32 %v628_v3, %v625_v1  ;;  %2025 = vmatprep.mubr.msk.f32.mxu0 %vm2483_vm0, %v2484_v9  ;;  %v642_v10 = vsub.f32 %v629_v5, %v626_v2  ;;  %v630_v11 = vld [vmem:[%s582_s11 + $0x10] sm:$0xff]  ;;  %v637_v14 = vld [vmem:[%s2773_s12] sm:$0xff]  ;;  %2226 = vset.pattern.permute.xlu1 %v2485_v17  ;;  %v764_v55 = vshrl.u32 %v763_v52, 7  ;;  %v2486_v56 = vmov 1966171168  }
  0xd2   : > { %v643_v13 = vsub.f32 %v630_v11, %v627_v8  ;;  %v638_v15 = vld [vmem:[%s2773_s12 + $0x8] sm:$0xff]  ;;  %2225 = vset.pattern.permute.xlu0 %v2485_v17  ;;  %v830_v18 = vsub.f32 1.0, %v637_v14  ;;  %v639_v19 = vld [vmem:[%s2773_s12 + $0x10] sm:$0xff]  ;;  %v774_v57 = vunpack.c.l.s4 %v2486_v56  ;;  %v2824_v0 = vld [vmem:[#allocation2] sm:$0x1] }
  0xd3   : > { %v650_v12 = vsub.f32 %v641_v7, %v1946_v6  ;;  %v651_v16 = vsub.f32 %v642_v10, %v1946_v6  ;;  %814 = vperm.xlu0 %2225, %v637_v14   ;;  %v831_v22 = vsub.f32 1.0, %v638_v15  ;;  %v832_v23 = vsub.f32 1.0, %v639_v19  ;;  %v668_v39 = vld [vmem:[#allocation7] sm:$0xff]  ;;  %v669_v40 = vld [vmem:[#allocation7 + $0x8] sm:$0xff]  ;;  %v670_v41 = vld [vmem:[#allocation7 + $0x10] sm:$0xff] }
  0xd4   : > { %v652_v21 = vsub.f32 %v643_v13, %v1946_v6  ;;  %835 = vperm.xlu1 %2226, %v830_v18   ;;  %v2227_v42 = vld [vmem:[#allocation10] sm:$0xff]   ;;  %v2229_v44 = vld [vmem:[#allocation10 + $0x8] sm:$0xff]   ;;  %v2231_v46 = vld [vmem:[#allocation10 + $0x10] sm:$0xff]   ;;  %v775_v60 = vunpack.c.0.s8 %v774_v57  ;;  %v765_v61 = vsub.s32 0, %v764_v55 }
  0xd5   : > { %v653_v20 = vmul.f32 0.15915494, %v650_v12  ;;  %v654_v24 = vmul.f32 0.15915494, %v651_v16  ;;  %v2228_v43 = vld [vmem:[#allocation8] sm:$0xff]   ;;  %v2230_v45 = vld [vmem:[#allocation8 + $0x8] sm:$0xff]  }
  0xd6   : > { %v655_v26 = vmul.f32 0.15915494, %v652_v21  ;;  %2054 = vmatprep.subr.bf16.mxu1 %v2228_v43  ;;  %v2232_v47 = vld [vmem:[#allocation8 + $0x10] sm:$0xff]   ;;  %v2233_v48 = vld [vmem:[#allocation10 + $0x18] sm:$0xff]   ;;  %v2235_v50 = vld [vmem:[#allocation10 + $0x20] sm:$0xff]   ;;  %v2828_v2 = vsub.s32 %v775_v60, %v764_v55  ;;  %v766_v3 = vrot.slane %v2824_v0, %v765_v61 }
  0xd7   : > { %v2083_v25 = vround.rtne.f32 %v653_v20  ;;  %v2084_v27 = vround.rtne.f32 %v654_v24  ;;  %819 = vperm.xlu0 %2225, %v638_v15   ;;  %2055 = vmatpush3.bf16.msra.mxu1 %v2228_v43  ;;  %v2234_v49 = vld [vmem:[#allocation8 + $0x18] sm:$0xff]   ;;  %v2236_v51 = vld [vmem:[#allocation8 + $0x20] sm:$0xff]   ;;  %v2237_v53 = vld [vmem:[#allocation10 + $0x28] sm:$0xff]   ;;  %v2492_v55 = vmov 1326507024  }
  0xd8   : > { %v2085_v29 = vround.rtne.f32 %v655_v26  ;;  %840 = vperm.xlu1 %2226, %v831_v22   ;;  %2056 = vmatprep.subr.bf16.mxu1 %v2230_v45  ;;  %v2238_v54 = vld [vmem:[#allocation8 + $0x28] sm:$0xff]   ;;  %v2239_v58 = vld [vmem:[#allocation10 + $0x30] sm:$0xff]   ;;  %v2241_v62 = vld [vmem:[#allocation10 + $0x38] sm:$0xff]  }
  0xd9   : > { %v659_v28 = vmul.f32 6.2831855, %v2083_v25  ;;  %v660_v30 = vmul.f32 6.2831855, %v2084_v27  ;;  %v2240_v59 = vld [vmem:[#allocation8 + $0x30] sm:$0xff]   ;;  %v2242_v63 = vld [vmem:[#allocation8 + $0x38] sm:$0xff]  }
  0xda   : > { %v661_v32 = vmul.f32 6.2831855, %v2085_v29 }
  0xdb   : > { %v662_v31 = vsub.f32 %v650_v12, %v659_v28  ;;  %v663_v33 = vsub.f32 %v651_v16, %v660_v30  ;;  %824 = vperm.xlu0 %2225, %v639_v19   ;;  %2057 = vmatpush3.bf16.msra.mxu1 %v2230_v45 }
  0xdc   : > { %v664_v36 = vsub.f32 %v652_v21, %v661_v32  ;;  %845 = vperm.xlu1 %2226, %v832_v23   ;;  %2058 = vmatprep.subr.bf16.mxu1 %v2232_v47 }
  0xdd   : > { %v665_v34 = vadd.f32 %v1946_v6, %v662_v31  ;;  %v666_v35 = vadd.f32 %v1946_v6, %v663_v33 }
  0xde   : > { %v2819_v38 = vadd.f32 %v1946_v6, %v664_v36 }
  0xdf   : > { %v2075_v37 = vpack.c.bf16 %v666_v35, %v665_v34  ;;  %2059 = vmatpush3.bf16.msra.mxu1 %v2232_v47 }
  0xe0   : > { %2060 = vmatprep.subr.bf16.mxu1 %v2234_v49  ;;  %v792_v1 = vcombine.high %v2819_v38, %v2819_v38 }
  0xe1   : > { %2076 = vmatpush3.bf16.msra.mxu0 %v2075_v37 }
  0xe2   : > { %2023 = vmatprep.subr.mxu0 %v2484_v9  ;;  %v799_v4 = vrot.slane %v792_v1, %v2828_v2 }
  0xe3   : > { %2061 = vmatpush3.bf16.msra.mxu1 %v2234_v49 }
  0xe4   : > { %2062 = vmatprep.subr.bf16.mxu1 %v2236_v51  ;;  %v800_v8 = vcombine.high %v799_v4, %v799_v4 }
  0xe5   : > { %2024 = vmatpush3.msra.mxu0 %v2819_v38 }
  0xe6   : > { %2026 = vmatmul.mubr.msk.f32.vlgmr.msra.gmra.mrb[0].mxu0 %vm671_vm1, %v668_v39  ;;  %2034 = vmatprep.subr.bf16.mxu0 %v2227_v42  ;;  %v2841_v16 = vrot.slane %v800_v8, %v2828_v2  ;;  %v2487_v39 = vmov 683565275  }
  0xe7   : > { %2028 = vmatprep.mubr.msk.f32.mxu0 %vm2483_vm0, %v2484_v9  ;;  %2035 = vmatpush3.bf16.msra.mxu0 %v2227_v42 }
  0xe8   : > { %2036 = vmatprep.subr.bf16.mxu0 %v2229_v44  ;;  %2063 = vmatpush3.bf16.msra.mxu1 %v2236_v51  ;;  %v808_v28 = vcombine.high %v2841_v16, %v2841_v16 }
  0xe9   : > { %2064 = vmatprep.subr.bf16.mxu1 %v2238_v54 }
  0xea   : > { %2029 = vmatmul.mubr.msk.f32.gmra.mrb[2].mxu0 %vm671_vm1, %v669_v40 }
  0xeb   : > { %2031 = vmatprep.mubr.msk.f32.mxu0 %vm2483_vm0, %v2484_v9  ;;  %2037 = vmatpush3.bf16.msra.mxu0 %v2229_v44  ;;  %v2489_v44 = vmov 2131351028  }
  0xec   : > { %2038 = vmatprep.subr.bf16.mxu0 %v2231_v46  ;;  %2065 = vmatpush3.bf16.msra.mxu1 %v2238_v54 }
  0xed   : > { %2066 = vmatprep.subr.bf16.mxu1 %v2240_v59 }
  0xee   : > { %2032 = vmatmul.mubr.msk.f32.gmra.mrb[4].mxu0 %vm671_vm1, %v670_v41  ;;  %v2488_v41 = vmov 2475754826  }
  0xef   : > { %2039 = vmatpush3.bf16.msra.mxu0 %v2231_v46  ;;  %v2490_v46 = vmov 2102212464  }
  0xf0   : > { %2040 = vmatprep.subr.bf16.mxu0 %v2233_v48  ;;  %2067 = vmatpush3.bf16.msra.mxu1 %v2240_v59 }
  0xf1   : > { %2068 = vmatprep.subr.bf16.mxu1 %v2242_v63 }
  0xf3   : > { %2041 = vmatpush3.bf16.msra.mxu0 %v2233_v48  ;;  %v2491_v48 = vmov 920167782  }
  0xf4   : > { %2042 = vmatprep.subr.bf16.mxu0 %v2235_v50  ;;  %2069 = vmatpush3.bf16.msra.mxu1 %v2242_v63 }
  0xf7   : > { %2043 = vmatpush3.bf16.msra.mxu0 %v2235_v50 }
  0xf8   : > { %2044 = vmatprep.subr.bf16.mxu0 %v2237_v53 }
  0xfb   : > { %2045 = vmatpush3.bf16.msra.mxu0 %v2237_v53 }
  0xfc   : > { %2046 = vmatprep.subr.bf16.mxu0 %v2239_v58 }
  0xff   : > { %2047 = vmatpush3.bf16.msra.mxu0 %v2239_v58 }
 0x100   : > { %2048 = vmatprep.subr.bf16.mxu0 %v2241_v62 }
 0x103   : > { %2049 = vmatpush3.bf16.msra.mxu0 %v2241_v62 }
 0x1b9   : > { %v747_v5 = vpop.f32.mrb[0].mxu0 }
 0x1ba   : > { %v2832_v6 = vadd.f32 %v766_v3, %v747_v5  ;;  %v2027_v7 = vpop.f32.mrb[1].mxu0 }
 0x1bc   : > { %v854_v9 = vand.u32 2147483647, %v2832_v6  ;;  %v857_v10 = vand.u32 2139095040, %v2832_v6 }
 0x1bd   : > { %v752_v11 = vpop.f32.mrb[2].mxu0 }
 0x1be   : > { %v858_v12 = vshrl.u32 %v857_v10, 23  ;;  %v861_v13 = vand.u32 8388607, %v854_v9  ;;  %v2838_v14 = vadd.f32 %v766_v3, %v752_v11  ;;  %v2030_v15 = vpop.f32.mrb[3].mxu0 }
 0x1c0   : > { %v1950_v17 = vadd.s32 4294967169, %v858_v12  ;;  %v957_v18 = vand.u32 2147483647, %v2838_v14  ;;  %v960_v19 = vand.u32 2139095040, %v2838_v14  ;;  %v862_v21 = vor.u32 8388608, %v861_v13 }
 0x1c1   : > { %v757_v20 = vpop.f32.mrb[4].mxu0 }
 0x1c2   : > { %v864_v22 = vadd.s32 1, %v1950_v17  ;;  %v961_v23 = vshrl.u32 %v960_v19, 23  ;;  %v964_v24 = vand.u32 8388607, %v957_v18  ;;  %v2847_v25 = vadd.f32 %v766_v3, %v757_v20  ;;  %v2033_v27 = vpop.f32.mrb[5].mxu0 }
 0x1c3   : > { %v772_v26 = vcombine.high %v757_v20, %v757_v20  ;;  %v2852_v34 = vshll.u32 %v862_v21, 8 }
 0x1c4   : > { %vm865_vm2 = vcmp.gt.s32.totalorder %v864_v22, 0  ;;  %v1954_v30 = vadd.s32 4294967169, %v961_v23  ;;  %v965_v35 = vor.u32 8388608, %v964_v24  ;;  %v1060_v37 = vand.u32 2147483647, %v2847_v25 }
 0x1c5   : > { %v866_v29 = vsel %vm865_vm2, %v864_v22, 0  ;;  %v779_v31 = vrot.slane %v772_v26, %v2828_v2  ;;  %v1063_v21 = vand.u32 2139095040, %v2847_v25 }
 0x1c6   : > { %v867_v32 = vshrl.u32 %v866_v29, 5  ;;  %v868_v33 = vand.u32 31, %v866_v29  ;;  %v967_v36 = vadd.s32 1, %v1954_v30  ;;  %v2875_v20 = vshll.u32 %v965_v35, 8 }
 0x1c7   : > { %v780_v43 = vcombine.high %v779_v31, %v779_v31 }
 0x1c8   : > { %v869_v38 = vsub.s32 32, %v868_v33  ;;  %v871_v40 = vshll.u32 %v2487_v39, %v868_v33  ;;  %v874_v42 = vshll.u32 %v2488_v41, %v868_v33  ;;  %v877_v45 = vshll.u32 %v2489_v44, %v868_v33 }
 0x1c9   : > { %v880_v47 = vshll.u32 %v2490_v46, %v868_v33  ;;  %v883_v49 = vshll.u32 %v2491_v48, %v868_v33  ;;  %vm886_vm3 = vcmp.lt.s32.totalorder %v867_v32, 1  ;;  %vm887_vm4 = vcmp.lt.s32.totalorder %v867_v32, 2 }
 0x1ca   : > { %v872_v50 = vshrl.u32 %v2488_v41, %v869_v38  ;;  %v875_v51 = vshrl.u32 %v2489_v44, %v869_v38  ;;  %v878_v52 = vshrl.u32 %v2490_v46, %v869_v38  ;;  %v870_v53 = vshrl.u32 %v2487_v39, %v869_v38 }
 0x1cb   : > { %v881_v54 = vshrl.u32 %v2491_v48, %v869_v38  ;;  %v884_v56 = vshrl.u32 %v2492_v55, %v869_v38  ;;  %vm888_vm5 = vcmp.lt.s32.totalorder %v867_v32, 3  ;;  %vm968_vm6 = vcmp.gt.s32.totalorder %v967_v36, 0 }
 0x1cc   : > { %v873_v57 = vor.u32 %v872_v50, %v871_v40  ;;  %v876_v58 = vor.u32 %v875_v51, %v874_v42  ;;  %v879_v59 = vor.u32 %v878_v52, %v877_v45  ;;  %vm889_vm7 = vcmp.lt.s32.totalorder %v867_v32, 4 }
 0x1cd   : > { %v882_v60 = vor.u32 %v881_v54, %v880_v47  ;;  %v885_v61 = vor.u32 %v884_v56, %v883_v49  ;;  %v969_v62 = vsel %vm968_vm6, %v967_v36, 0  ;;  %v787_v30 = vrot.slane %v780_v43, %v2828_v2 }
 0x1ce   : > { %v890_v63 = vsel %vm886_vm3, %v870_v53, %v873_v57  ;;  %v891_v1 = vsel %vm889_vm7, %v879_v59, 2102212464  ;;  %v894_v3 = vsel %vm886_vm3, %v873_v57, %v876_v58  ;;  %v898_v4 = vsel %vm886_vm3, %v876_v58, %v879_v59 }
 0x1cf   : > { %v892_v5 = vsel %vm888_vm5, %v876_v58, %v891_v1  ;;  %v895_v7 = vsel %vm889_vm7, %v882_v60, 920167782  ;;  %v899_v8 = vsel %vm889_vm7, %v885_v61, 1326507024  ;;  %v970_v10 = vshrl.u32 %v969_v62, 5 }
 0x1d0   : > { %v893_v11 = vsel %vm887_vm4, %v890_v63, %v892_v5  ;;  %v896_v12 = vsel %vm888_vm5, %v879_v59, %v895_v7  ;;  %v900_v13 = vsel %vm888_vm5, %v882_v60, %v899_v8  ;;  %v971_v15 = vand.u32 31, %v969_v62 }
 0x1d1   : > { %v897_v17 = vsel %vm887_vm4, %v894_v3, %v896_v12  ;;  %v901_v19 = vsel %vm887_vm4, %v898_v4, %v900_v13  ;;  %v909_v27 = vmul.u32 %v2852_v34, %v893_v11  ;;  %vm989_vm8 = vcmp.lt.s32.totalorder %v970_v10, 1 }
 0x1d2   : > { %v2879_v22 = vmul.u32.u64.low %v2852_v34, %v901_v19  ;;  %v2880_v23 = vmul.u32.u64.high %v2852_v34, %v901_v19, %v2879_v22  ;;  %v2883_v24 = vmul.u32.u64.low %v2852_v34, %v897_v17  ;;  %v2884_v26 = vmul.u32.u64.high %v2852_v34, %v897_v17, %v2883_v24 }
 0x1d3   : > { %v972_v29 = vsub.s32 32, %v971_v15  ;;  %v974_v31 = vshll.u32 %v2487_v39, %v971_v15  ;;  %v977_v32 = vshll.u32 %v2488_v41, %v971_v15  ;;  %v980_v33 = vshll.u32 %v2489_v44, %v971_v15 }
 0x1d4   : > { %v983_v35 = vshll.u32 %v2490_v46, %v971_v15  ;;  %v986_v34 = vshll.u32 %v2491_v48, %v971_v15  ;;  %vm911_vm9 = vc.u32 %v2880_v23, %v2883_v24  ;;  %v912_v2 = vadd.s32 1, %v2884_v26 }
 0x1d5   : > { %v975_v36 = vshrl.u32 %v2488_v41, %v972_v29  ;;  %v978_v38 = vshrl.u32 %v2489_v44, %v972_v29  ;;  %v981_v40 = vshrl.u32 %v2490_v46, %v972_v29  ;;  %v984_v42 = vshrl.u32 %v2491_v48, %v972_v29 }
 0x1d6   : > { %vm990_vm10 = vcmp.lt.s32.totalorder %v970_v10, 2  ;;  %v987_v49 = vshrl.u32 %v2492_v55, %v972_v29  ;;  %v913_v50 = vsel %vm911_vm9, %v912_v2, %v2884_v26  ;;  %vm992_vm11 = vcmp.lt.s32.totalorder %v970_v10, 4 }
 0x1d7   : > { %v976_v43 = vor.u32 %v975_v36, %v974_v31  ;;  %v979_v45 = vor.u32 %v978_v38, %v977_v32  ;;  %v982_v47 = vor.u32 %v981_v40, %v980_v33  ;;  %v985_v51 = vor.u32 %v984_v42, %v983_v35 }
 0x1d8   : > { %v788_v52 = vcombine.high %v787_v30, %v787_v30  ;;  %v914_v53 = vadd.s32 %v913_v50, %v909_v27  ;;  %v973_v54 = vshrl.u32 %v2487_v39, %v972_v29  ;;  %v988_v56 = vor.u32 %v987_v49, %v986_v34 }
 0x1d9   : > { %v994_v57 = vsel %vm992_vm11, %v982_v47, 2102212464  ;;  %vm991_vm12 = vcmp.lt.s32.totalorder %v970_v10, 3  ;;  %v997_v58 = vsel %vm989_vm8, %v976_v43, %v979_v45  ;;  %v998_v59 = vsel %vm992_vm11, %v985_v51, 920167782 }
 0x1da   : > { %v1001_v60 = vsel %vm989_vm8, %v979_v45, %v982_v47  ;;  %v915_v61 = vadd.s32 536870912, %v914_v53  ;;  %v993_v62 = vsel %vm989_vm8, %v973_v54, %v976_v43  ;;  %v999_v63 = vsel %vm991_vm12, %v982_v47, %v998_v59 }
 0x1db   : > { %v1002_v1 = vsel %vm992_vm11, %v988_v56, 1326507024  ;;  %v995_v3 = vsel %vm991_vm12, %v979_v45, %v994_v57  ;;  %v1000_v4 = vsel %vm990_vm10, %v997_v58, %v999_v63  ;;  %v790_v7 = vadd.f32 %v788_v52, %v2824_v0 }
 0x1dc   : > { %v1003_v5 = vsel %vm991_vm12, %v985_v51, %v1002_v1  ;;  %v2909_v8 = vshrl.u32 %v915_v61, 30  ;;  %v2913_v12 = vmul.u32.u64.low %v2875_v20, %v1000_v4  ;;  %v2914_v13 = vmul.u32.u64.high %v2875_v20, %v1000_v4, %v2913_v12 }
 0x1dd   : > { %v1004_v11 = vsel %vm990_vm10, %v1001_v60, %v1003_v5  ;;  %v810_v19 = vadd.f32 %v808_v28, %v790_v7  ;;  %v1064_v22 = vshrl.u32 %v1063_v21, 23  ;;  %v996_v26 = vsel %vm990_vm10, %v993_v62, %v995_v3 }
 0x1de   : > { %v2918_v15 = vmul.u32.u64.low %v2875_v20, %v1004_v11  ;;  %v2919_v17 = vmul.u32.u64.high %v2875_v20, %v1004_v11, %v2918_v15  ;;  %v917_v0 = vshll.u32 %v2909_v8, 30  ;;  %v1067_v29 = vand.u32 8388607, %v1060_v37 }
 0x1df   : > { %811 = vst [vmem:[#allocation2] sm:$0x1] %v810_v19  ;;  %v1958_v27 = vadd.s32 4294967169, %v1064_v22  ;;  %v1015_v31 = vadd.s32 1, %v2914_v13  ;;  %v1012_v32 = vmul.u32 %v2875_v20, %v996_v26  ;;  %v910_v2 = vadd.s32 %v2883_v24, %v2880_v23 }
 0x1e0   : > { %v918_v30 = vsub.s32 %v914_v53, %v917_v0  ;;  %vm1014_vm13 = vc.u32 %v2919_v17, %v2913_v12  ;;  %v1068_v10 = vor.u32 8388608, %v1067_v29  ;;  %vm856_vm5 = vcmp.lt.s32.totalorder %v2832_v6, 0 }
 0x1e1   : > { %v1070_v16 = vadd.s32 1, %v1958_v27  ;;  %v1016_v21 = vsel %vm1014_vm13, %v1015_v31, %v2914_v13  ;;  %vm855_vm6 = vcmp.le.f32.partialorder %v854_v9, 0.7853982  ;;  %vm959_vm8 = vcmp.lt.s32.totalorder %v2838_v14, 0 }
 0x1e2   : > { %v920_v28 = vsub.s32 0, %v918_v30  ;;  %v1017_v33 = vadd.s32 %v1016_v21, %v1012_v32  ;;  %v2937_v43 = vshll.u32 %v1068_v10, 8  ;;  %vm958_vm9 = vcmp.le.f32.partialorder %v957_v18, 0.7853982 }
 0x1e3   : > { %vm1071_vm14 = vcmp.gt.s32.totalorder %v1070_v16, 0 }
 0x1e4   : > { %v1951_v35 = vmin.u32 %v920_v28, %v918_v30  ;;  %v1072_v36 = vsel %vm1071_vm14, %v1070_v16, 0  ;;  %v1018_v38 = vadd.s32 536870912, %v1017_v33 }
 0x1e5   : > { %v1074_v40 = vand.u32 31, %v1072_v36  ;;  %v1073_v47 = vshrl.u32 %v1072_v36, 5  ;;  %v940_v36 = vsub.s32 4, %v2909_v8 }
 0x1e6   : > { %v922_v34 = vclz %v1951_v35  ;;  %v2935_v42 = vshrl.u32 %v1018_v38, 30 }
 0x1e7   : > { %v1075_v20 = vsub.s32 32, %v1074_v40  ;;  %v1077_v49 = vshll.u32 %v2487_v39, %v1074_v40  ;;  %v1080_v50 = vshll.u32 %v2488_v41, %v1074_v40  ;;  %v1083_v53 = vshll.u32 %v2489_v44, %v1074_v40 }
 0x1e8   : > { %v1952_v45 = vadd.s32 4294967294, %v922_v34  ;;  %v1020_v51 = vshll.u32 %v2935_v42, 30  ;;  %v1086_v54 = vshll.u32 %v2490_v46, %v1074_v40  ;;  %v1089_v60 = vshll.u32 %v2491_v48, %v1074_v40 }
 0x1e9   : > { %v1078_v52 = vshrl.u32 %v2488_v41, %v1075_v20  ;;  %v1081_v23 = vshrl.u32 %v2489_v44, %v1075_v20  ;;  %v1084_v24 = vshrl.u32 %v2490_v46, %v1075_v20  ;;  %v1087_v56 = vshrl.u32 %v2491_v48, %v1075_v20 }
 0x1ea   : > { %vm1953_vm15 = vcmp.lt.s32.totalorder %v1952_v45, 0  ;;  %v2948_v58 = vsub.s32 %v1017_v33, %v1020_v51  ;;  %v1076_v59 = vshrl.u32 %v2487_v39, %v1075_v20  ;;  %v1090_v44 = vshrl.u32 %v2492_v55, %v1075_v20 }
 0x1eb   : > { %v925_v57 = vsel %vm1953_vm15, 0, %v1952_v45  ;;  %v1079_v62 = vor.u32 %v1078_v52, %v1077_v49  ;;  %v1082_v63 = vor.u32 %v1081_v23, %v1080_v50  ;;  %v1085_v3 = vor.u32 %v1084_v24, %v1083_v53 }
 0x1ec   : > { %v926_v61 = vsub.s32 32, %v925_v57  ;;  %v930_v41 = vsub.s32 4294967266, %v925_v57  ;;  %v1023_v1 = vsub.s32 0, %v2948_v58  ;;  %v1088_v4 = vor.u32 %v1087_v56, %v1086_v54 }
 0x1ed   : > { %v927_v46 = vshll.u32 %v918_v30, %v925_v57  ;;  %vm1092_vm0 = vcmp.lt.s32.totalorder %v1073_v47, 1  ;;  %v1091_v13 = vor.u32 %v1090_v44, %v1089_v60  ;;  %vm1093_vm1 = vcmp.lt.s32.totalorder %v1073_v47, 2 }
 0x1ee   : > { %v928_v5 = vshrl.u32 %v910_v2, %v926_v61  ;;  %v931_v7 = vadd.s32 127, %v930_v41  ;;  %v1955_v11 = vmin.u32 %v1023_v1, %v2948_v58  ;;  %vm1095_vm2 = vcmp.lt.s32.totalorder %v1073_v47, 4 }
 0x1ef   : > { %vm1094_vm3 = vcmp.lt.s32.totalorder %v1073_v47, 3  ;;  %v1097_v15 = vsel %vm1095_vm2, %v1085_v3, 2102212464  ;;  %v1096_v22 = vsel %vm1092_vm0, %v1076_v59, %v1079_v62  ;;  %v1100_v0 = vsel %vm1092_vm0, %v1079_v62, %v1082_v63 }
 0x1f0   : > { %v929_v39 = vor.u32 %v928_v5, %v927_v46  ;;  %v932_v48 = vshll.u32 %v931_v7, 23  ;;  %v1025_v19 = vclz %v1955_v11  ;;  %v1101_v55 = vsel %vm1095_vm2, %v1088_v4, 920167782  ;;  %v634_v11 = vld [vmem:[%s2807_s17] sm:$0xff] }
 0x1f1   : > { %v1098_v29 = vsel %vm1094_vm3, %v1082_v63, %v1097_v15  ;;  %v1102_v30 = vsel %vm1094_vm3, %v1085_v3, %v1101_v55  ;;  %v1104_v16 = vsel %vm1092_vm0, %v1082_v63, %v1085_v3  ;;  %v1105_v28 = vsel %vm1095_vm2, %v1091_v13, 1326507024 }
 0x1f2   : > { %v933_v26 = vor.u32 4788187, %v932_v48  ;;  %v936_v27 = vcvt.s32.f32 %v929_v39  ;;  %v1956_v31 = vadd.s32 4294967294, %v1025_v19  ;;  %v1103_v32 = vsel %vm1093_vm1, %v1100_v0, %v1102_v30  ;;  %v836_v0 = vpop.permute.xlu1 %835  ;;  %v631_v30 = vld [vmem:[%s2802_s9] sm:$0xff] }
 0x1f3   : > { %v1106_v33 = vsel %vm1094_vm3, %v1088_v4, %v1105_v28  ;;  %v2963_v10 = vmul.u32.u64.low %v2937_v43, %v1103_v32  ;;  %v2964_v35 = vmul.u32.u64.high %v2937_v43, %v1103_v32, %v2963_v10  ;;  %v1013_v45 = vadd.s32 %v2913_v12, %v2919_v17 }
 0x1f4   : > { %v934_v21 = vand.u32 2147483647, %v933_v26  ;;  %vm1957_vm4 = vcmp.lt.s32.totalorder %v1956_v31, 0  ;;  %v1107_v38 = vsel %vm1093_vm1, %v1104_v16, %v1106_v33  ;;  %v1099_v51 = vsel %vm1093_vm1, %v1096_v22, %v1098_v29  ;;  %v815_v22 = vpop.permute.xlu0 %814  ;;  %v635_v33 = vld [vmem:[%s2807_s17 + $0x8] sm:$0xff] }
 0x1f5   : > { %v1028_v34 = vsel %vm1957_vm4, 0, %v1956_v31  ;;  %v2970_v2 = vmul.u32.u64.low %v2937_v43, %v1107_v38  ;;  %v2971_v20 = vmul.u32.u64.high %v2937_v43, %v1107_v38, %v2970_v2  ;;  %v1118_v53 = vadd.s32 1, %v2964_v35 }
 0x1f6   : > { %v937_v40 = vmul.f32 %v936_v27, %v934_v21  ;;  %v1029_v49 = vsub.s32 32, %v1028_v34  ;;  %v1033_v50 = vsub.s32 4294967266, %v1028_v34  ;;  %v941_v54 = vsel %vm856_vm5, %v940_v36, %v2909_v8 }
 0x1f7   : > { %v1030_v23 = vshll.u32 %v2948_v58, %v1028_v34  ;;  %v1115_v12 = vmul.u32 %v2937_v43, %v1099_v51  ;;  %vm1117_vm7 = vc.u32 %v2971_v20, %v2963_v10  ;;  %v943_v58 = vsel %vm855_vm6, 0, %v941_v54 }
 0x1f8   : > { %v938_v52 = vxor.u32 2147483648, %v937_v40  ;;  %v1031_v24 = vshrl.u32 %v1013_v45, %v1029_v49  ;;  %v1034_v56 = vadd.s32 127, %v1033_v50  ;;  %v1119_v60 = vsel %vm1117_vm7, %v1118_v53, %v2964_v35  ;;  %v632_v35 = vld [vmem:[%s2802_s9 + $0x8] sm:$0xff]  ;;  %v820_v45 = vpop.permute.xlu0 %819  ;;  %v841_v49 = vpop.permute.xlu1 %840 }
 0x1f9   : > { %v1120_v8 = vadd.s32 %v1119_v60, %v1115_v12  ;;  %v1043_v43 = vsub.s32 4, %v2935_v42  ;;  %v1259_v63 = vadd.s32 3, %v943_v58  ;;  %v947_v13 = vand.u32 3, %v943_v58 }
 0x1fa   : > { %v939_v57 = vsel %vm856_vm5, %v938_v52, %v937_v40  ;;  %v1032_v47 = vor.u32 %v1031_v24, %v1030_v23  ;;  %v1035_v59 = vshll.u32 %v1034_v56, 23  ;;  %vm946_vm15 = vweird.f32 %v2832_v6 }
 0x1fb   : > { %v942_v17 = vsel %vm855_vm6, %v2832_v6, %v939_v57  ;;  %v1121_v41 = vadd.s32 536870912, %v1120_v8  ;;  %v1044_v46 = vsel %vm959_vm8, %v1043_v43, %v2935_v42  ;;  %v1260_v5 = vand.u32 3, %v1259_v63 }
 0x1fc   : > { %2243 = vcosq.f32 %v942_v17  ;;  %v1036_v61 = vor.u32 4788187, %v1035_v59  ;;  %v1039_v62 = vcvt.s32.f32 %v1032_v47  ;;  %v1046_v55 = vsel %vm958_vm9, 0, %v1044_v46 }
 0x1fd   : > { %2245 = vsinq.f32 %v942_v17  ;;  %v2988_v1 = vshrl.u32 %v1121_v41, 30  ;;  %v827_v42 = vmul.f32 %v815_v22, %v634_v11  ;;  %vm1265_vm10 = vcmp.eq.s32.totalorder %v1260_v5, 2 }
 0x1fe   : > { %v1037_v9 = vand.u32 2147483647, %v1036_v61  ;;  %vm952_vm11 = vcmp.eq.s32.totalorder %v947_v13, 2  ;;  %vm1262_vm12 = vcmp.eq.s32.totalorder %v1260_v5, 0  ;;  %v1363_v32 = vadd.s32 3, %v1046_v55 }
 0x1ff   : > { %v1123_v4 = vshll.u32 %v2988_v1, 30  ;;  %vm1261_vm13 = vcmp.lt.s32.totalorder %v1260_v5, 2  ;;  %vm949_vm14 = vcmp.eq.s32.totalorder %v947_v13, 0  ;;  %vm948_vm0 = vcmp.lt.s32.totalorder %v947_v13, 2 }
 0x200   : > { %v1040_v3 = vmul.f32 %v1039_v62, %v1037_v9  ;;  %v848_v34 = vmul.f32 %v836_v0, %v631_v30  ;;  %v828_v51 = vmul.f32 %v820_v45, %v635_v33  ;;  %v849_v52 = vmul.f32 %v841_v49, %v632_v35  ;;  %v825_v30 = vpop.permute.xlu0 %824 }
 0x201   : > { %v2993_v7 = vsub.s32 %v1120_v8, %v1123_v4  ;;  %v1364_v53 = vand.u32 3, %v1363_v32  ;;  %v1050_v24 = vand.u32 3, %v1046_v55  ;;  %v1116_v56 = vadd.s32 %v2963_v10, %v2971_v20  ;;  %v846_v32 = vpop.permute.xlu1 %845 }
 0x202   : > { %v1041_v44 = vxor.u32 2147483648, %v1040_v3  ;;  %v851_v17 = vadd.f32 %v848_v34, %v827_v42  ;;  %v852_v47 = vadd.f32 %v849_v52, %v828_v51  ;;  %v1146_v22 = vsub.s32 4, %v2988_v1 }
 0x203   : > { %v1126_v19 = vsub.s32 0, %v2993_v7  ;;  %vm1366_vm2 = vcmp.eq.s32.totalorder %v1364_v53, 0  ;;  %vm1369_vm3 = vcmp.eq.s32.totalorder %v1364_v53, 2  ;;  %vm1052_vm4 = vcmp.eq.s32.totalorder %v1050_v24, 0 }
 0x204   : > { %v1042_v39 = vsel %vm959_vm8, %v1041_v44, %v1040_v3  ;;  %vm1055_vm5 = vcmp.eq.s32.totalorder %v1050_v24, 2  ;;  %vm1365_vm6 = vcmp.lt.s32.totalorder %v1364_v53, 2  ;;  %vm1051_vm7 = vcmp.lt.s32.totalorder %v1050_v24, 2 }
 0x205   : > { %v1045_v15 = vsel %vm958_vm9, %v2838_v14, %v1042_v39  ;;  %v1959_v18 = vmin.u32 %v1126_v19, %v2993_v7  ;;  %vm1049_vm8 = vweird.f32 %v2838_v14  ;;  %vm1062_vm9 = vcmp.lt.s32.totalorder %v2847_v25, 0 }
 0x206   : > { %v2244_v48 = vpop.eup %2243  ;;  %2247 = vcosq.f32 %v1045_v15  ;;  %v1147_v42 = vsel %vm1062_vm9, %v1146_v22, %v2988_v1 }
 0x207   : > { %v2246_v26 = vpop.eup %2245  ;;  %v953_v27 = vxor.u32 2147483648, %v2244_v48  ;;  %2249 = vsinq.f32 %v1045_v15  ;;  %v1128_v28 = vclz %v1959_v18 }
 0x208   : > { %v950_v29 = vxor.u32 2147483648, %v2246_v26 }
 0x209   : > { %v1267_v31 = vsel %vm1265_vm10, %v953_v27, %v2246_v26  ;;  %v954_v16 = vsel %vm952_vm11, %v953_v27, %v2246_v26  ;;  %v1960_v40 = vadd.s32 4294967294, %v1128_v28  ;;  %vm1061_vm10 = vcmp.le.f32.partialorder %v1060_v37, 0.7853982 }
 0x20a   : > { %v1264_v21 = vsel %vm1262_vm12, %v2244_v48, %v950_v29  ;;  %v951_v38 = vsel %vm949_vm14, %v2244_v48, %v950_v29  ;;  %v1149_v18 = vsel %vm1061_vm10, 0, %v1147_v42 }
 0x20b   : > { %v1268_v36 = vsel %vm1261_vm13, %v1264_v21, %v1267_v31  ;;  %v955_v50 = vsel %vm948_vm0, %v951_v38, %v954_v16  ;;  %vm1961_vm1 = vcmp.lt.s32.totalorder %v1960_v40, 0  ;;  %v1467_v29 = vadd.s32 3, %v1149_v18  ;;  %v636_v31 = vld [vmem:[%s2807_s17 + $0x10] sm:$0xff] }
 0x20c   : > { %v1269_v2 = vsel %vm946_vm15, nan, %v1268_v36  ;;  %v956_v54 = vsel %vm946_vm15, nan, %v955_v50  ;;  %v1131_v23 = vsel %vm1961_vm1, 0, %v1960_v40  ;;  %v633_v16 = vld [vmem:[%s2802_s9 + $0x10] sm:$0xff]  ;;  %v1153_v21 = vand.u32 3, %v1149_v18 }
 0x20d   : > { %v1132_v6 = vsub.s32 32, %v1131_v23  ;;  %v1136_v57 = vsub.s32 4294967266, %v1131_v23  ;;  %v1133_v60 = vshll.u32 %v2993_v7, %v1131_v23  ;;  %v1478_v46 = vmul.f32 %v1269_v2, %v851_v17 }
 0x20e   : > { %v1163_v11 = vmul.f32 %v956_v54, %v851_v17  ;;  %v1468_v28 = vand.u32 3, %v1467_v29  ;;  %v829_v36 = vmul.f32 %v825_v30, %v636_v31  ;;  %v850_v38 = vmul.f32 %v846_v32, %v633_v16 }
 0x20f   : > { %v1134_v8 = vshrl.u32 %v1116_v56, %v1132_v6  ;;  %v1137_v58 = vadd.s32 127, %v1136_v57  ;;  %vm1158_vm12 = vcmp.eq.s32.totalorder %v1153_v21, 2  ;;  %vm1155_vm14 = vcmp.eq.s32.totalorder %v1153_v21, 0 }
 0x210   : > { %v2248_v12 = vpop.eup %2247  ;;  %vm1473_vm11 = vcmp.eq.s32.totalorder %v1468_v28, 2  ;;  %vm1470_vm13 = vcmp.eq.s32.totalorder %v1468_v28, 0  ;;  %vm1469_vm15 = vcmp.lt.s32.totalorder %v1468_v28, 2  ;;  %vm1154_vm0 = vcmp.lt.s32.totalorder %v1153_v21, 2 }
 0x211   : > { %v2250_v59 = vpop.eup %2249  ;;  %v1056_v61 = vxor.u32 2147483648, %v2248_v12  ;;  %v1135_v9 = vor.u32 %v1134_v8, %v1133_v60  ;;  %v1138_v62 = vshll.u32 %v1137_v58, 23  ;;  %v853_v49 = vadd.f32 %v850_v38, %v829_v36 }
 0x212   : > { %v1053_v41 = vxor.u32 2147483648, %v2250_v59  ;;  %vm1152_vm1 = vweird.f32 %v2847_v25 }
 0x213   : > { %v1371_v43 = vsel %vm1369_vm3, %v1056_v61, %v2250_v59  ;;  %v1057_v10 = vsel %vm1055_vm5, %v1056_v61, %v2250_v59  ;;  %v1139_v3 = vor.u32 4788187, %v1138_v62  ;;  %v1142_v39 = vcvt.s32.f32 %v1135_v9 }
 0x214   : > { %v1368_v20 = vsel %vm1366_vm2, %v2248_v12, %v1053_v41  ;;  %v1054_v63 = vsel %vm1052_vm4, %v2248_v12, %v1053_v41 }
 0x215   : > { %v1372_v4 = vsel %vm1365_vm6, %v1368_v20, %v1371_v43  ;;  %v1058_v44 = vsel %vm1051_vm7, %v1054_v63, %v1057_v10  ;;  %v1140_v13 = vand.u32 2147483647, %v1139_v3 }
 0x216   : > { %v1373_v5 = vsel %vm1049_vm8, nan, %v1372_v4  ;;  %v1059_v7 = vsel %vm1049_vm8, nan, %v1058_v44 }
 0x217   : > { %v1479_v48 = vmul.f32 %v1373_v5, %v852_v47  ;;  %v1164_v15 = vmul.f32 %v1059_v7, %v852_v47  ;;  %v1143_v19 = vmul.f32 %v1142_v39, %v1140_v13 }
 0x219   : > { %v1499_v0 = vpack.c.bf16 %v1479_v48, %v1478_v46  ;;  %v1481_v55 = vpack.c.bf16 %v1164_v15, %v1163_v11  ;;  %v1144_v26 = vxor.u32 2147483648, %v1143_v19 }
 0x21b   : > { %2050 = vmatprep.mubr.bf16.mxu0 %v1499_v0  ;;  %2070 = vmatprep.mubr.bf16.mxu1 %v1481_v55  ;;  %v1145_v14 = vsel %vm1062_vm9, %v1144_v26, %v1143_v19 }
 0x21c   : > { %v1148_v27 = vsel %vm1061_vm10, %v2847_v25, %v1145_v14 }
 0x21d   : > { %2251 = vcosq.f32 %v1148_v27 }
 0x21e   : > { %2253 = vsinq.f32 %v1148_v27 }
 0x227   : > { %v2252_v33 = vpop.eup %2251 }
 0x228   : > { %v2254_v35 = vpop.eup %2253  ;;  %v1159_v37 = vxor.u32 2147483648, %v2252_v33 }
 0x229   : > { %v1156_v40 = vxor.u32 2147483648, %v2254_v35 }
 0x22a   : > { %v1475_v1 = vsel %vm1473_vm11, %v1159_v37, %v2254_v35  ;;  %v1160_v34 = vsel %vm1158_vm12, %v1159_v37, %v2254_v35 }
 0x22b   : > { %v1472_v2 = vsel %vm1470_vm13, %v2252_v33, %v1156_v40  ;;  %v1157_v45 = vsel %vm1155_vm14, %v2252_v33, %v1156_v40 }
 0x22c   : > { %v1476_v50 = vsel %vm1469_vm15, %v1472_v2, %v1475_v1  ;;  %v1161_v51 = vsel %vm1154_vm0, %v1157_v45, %v1160_v34 }
 0x22d   : > { %v1477_v52 = vsel %vm1152_vm1, nan, %v1476_v50  ;;  %v1162_v53 = vsel %vm1152_vm1, nan, %v1161_v51 }
 0x22e   : > { %v1480_v54 = vmul.f32 %v1477_v52, %v853_v49  ;;  %v1165_v23 = vmul.f32 %v1162_v53, %v853_v49 }
 0x230   : > { %v1500_v24 = vpack.c.bf16 %v1480_v54, %v1480_v54  ;;  %v1482_v56 = vpack.c.bf16 %v1165_v23, %v1165_v23 }
 0x232   : > { %2051 = vmatmul.mubr.bf16.vlgmr.msra.gmra.mrb[8].mxu0 %v1500_v24  ;;  %2071 = vmatmul.mubr.bf16.vlgmr.msra.gmra.mrb[0].mxu1 %v1482_v56 }
 0x305   : > { %v2052_v6 = vpop.f32.mrb[8].mxu0  ;;  %v2072_v57 = vpop.f32.mrb[0].mxu1 }
 0x306   : > { %v1704_v12 = vadd.f32 %v2072_v57, %v2052_v6  ;;  %v1599_v17 = vpop.f32.mrb[9].mxu0  ;;  %v1695_v47 = vpop.f32.mrb[1].mxu1 }
 0x307   : > { %v1696_v59 = vadd.f32 %v1695_v47, %v1599_v17  ;;  %v2053_v25 = vpop.f32.mrb[10].mxu0  ;;  %v2073_v60 = vpop.f32.mrb[2].mxu1 }
 0x308   : > { %1711 = vst [vmem:[%s2812_s3 + $0x10] sm:$0xff] %v1704_v12  ;;  %v1602_v8 = vpop.f32.mrb[11].mxu0  ;;  %v1698_v58 = vpop.f32.mrb[3].mxu1 }
 0x309   : > { %1709 = vst [vmem:[%s2812_s3] sm:$0xff] %v1696_v59  ;;  %v1699_v61 = vadd.f32 %v1698_v58, %v1602_v8 }
 0x30b   : > { %1710 = vst [vmem:[%s2812_s3 + $0x8] sm:$0xff] %v1699_v61 }
 0x30c PF: > { %s25_s20 = sadd.s32 1, %s2471_s20   ;;  %s3098_s4 = sld [smem:[#allocation14_spill]] }
 0x30d   : > { %p22_p1 = scmp.ge.s32.totalorder %s25_s20, 6   ;;  %s3099_s7 = sld [smem:[#allocation15_spill]] }
 0x30e   : > { %s3100_s13 = smov %s2447_s14  ;;  %s3101_s14 = smov %s2451_s15 }
 0x30f   : > { %s3102_s15 = smov %s2725_s30  ;;  %s3103_s16 = smov %s2463_s18 }
 0x310   : > { %s3104_s17 = smov %s2467_s19  ;;  %24 = sbr.rel (!%p22_p1) target bundleno = 17 (0x11), region = 135 }
 0x312   : > { %s3105_s18 = smov %s3098_s4 }
 0x313   : > { %s3106_s19 = smov %s3099_s7 }
 0x317   :  { %1742 = vsyncpa [#allocation4], 1 }
 0x318   :  { %1744 = vsyncpa [#allocation4 + $0x1], 1 }
 0x319   :  { %1745 = vsyncpa [#allocation6], 1 }
 0x31a   :  { %1746 = vsyncpa [#allocation9], 1 }

// kernel: _forward_impl.5
= control target key start
LH: loop header
LB: loop body
LE: loop exit
PB: predicated region body
PF: predicated region fallthrough
CT: control target
= control target key end

     0   :  { %s702_s9 = smov 0   ;;  %s704_s10 = smov 0   ;;  %s914_s0 = inlined_call_operand.vmem [shape: f32[2,17,1280], index: 0, kind: input, shape index: {}]   ;;  %s915_s1 = inlined_call_operand.vmem [shape: f32[17,1280], index: 1, kind: input, shape index: {}]   ;;  %s916_s2 = inlined_call_operand.vmem [shape: f32[2,1280], index: 2, kind: output, shape index: {}]  }
   0x1   :  { %s706_s11 = smov 0  }
   0x2 LB: > { %s621_s12 = sadd.s32 4294967295, %s684_s11   ;;  %s719_s13 = sadd.s32 1, %s684_s11   ;;  %s684_s11 = sphi %s706_s11, %s920_s11   ;;  %s680_s10 = sphi %s704_s10, %s919_s10   ;;  %s676_s9 = sphi %s702_s9, %s918_s9  }
   0x3   : > { %s16_s14 = ssub.s32 %s684_s11, %s719_s13  ;;  %s19_s15 = sadd.s32 1, %s680_s10 }
   0x4   : > { %p17_p0 = scmp.eq.s32.totalorder %s16_s14, 0  ;;  %p26_p1 = scmp.ne.s32.totalorder %s680_s10, %s676_s9 }
   0x5   : > { %p27_p2 = scmp.eq.s32.totalorder %s684_s11, 0  ;;  %p624_p4 = scmp.ge.s32.totalorder %s684_s11, 2 }
   0x6   : > { %s728_s16 = scalar_select %p17_p0, %s680_s10, %s19_s15  }
   0x7   : > { %p730_p3 = por %p27_p2, %p26_p1  ;;  %104 = sbr.rel (%p624_p4) target bundleno = 47 (0x2f), region = 16 }
   0xe   : > { %107 = sbr.rel (!%p730_p3) target bundleno = 34 (0x22), region = 20  ;;  %s109_s18 = sand.u32 (%p730_p3), 1, %s680_s10  }
   0xf   : > { %s631_s19 = smul.u32 (%p730_p3), 40, %s684_s11 }
  0x10   : > { %s633_s20 = smul.u32 (%p730_p3), 240, %s109_s18 }
  0x11   : > { %s742_s23 = scalar_lea.vmem (%p730_p3), %s914_s0, %s631_s19 }
  0x12   : > { %v127_v0 = vld [vmem:[%s742_s23] sm:$0xff] (%p730_p3)  ;;  %v129_v1 = vld [vmem:[%s742_s23 + $0x8] sm:$0xff] (%p730_p3)  ;;  %v131_v2 = vld [vmem:[%s742_s23 + $0x10] sm:$0xff] (%p730_p3)  ;;  %s747_s24 = scalar_lea.vmem (%p730_p3), [#allocation2], %s633_s20 }
  0x13   : > { %128 = vst [vmem:[%s747_s24] sm:$0xff] (%p730_p3), %v127_v0  ;;  %130 = vst [vmem:[%s747_s24 + $0x8] sm:$0xff] (%p730_p3), %v129_v1  ;;  %v133_v3 = vld [vmem:[%s742_s23 + $0x18] sm:$0xff] (%p730_p3)  ;;  %v135_v4 = vld [vmem:[%s742_s23 + $0x20] sm:$0xff] (%p730_p3) }
  0x14   : > { %132 = vst [vmem:[%s747_s24 + $0x10] sm:$0xff] (%p730_p3), %v131_v2  ;;  %v137_v5 = vld [vmem:[%s742_s23 + $0x50] sm:$0xff] (%p730_p3)  ;;  %134 = vst [vmem:[%s747_s24 + $0x18] sm:$0xff] (%p730_p3), %v133_v3  ;;  %v139_v6 = vld [vmem:[%s742_s23 + $0x58] sm:$0xff] (%p730_p3) }
  0x15   : > { %136 = vst [vmem:[%s747_s24 + $0x20] sm:$0xff] %v135_v4  ;;  %138 = vst [vmem:[%s747_s24 + $0x28] sm:$0xff] %v137_v5  ;;  %v141_v7 = vld [vmem:[%s742_s23 + $0x60] sm:$0xff]  ;;  %v143_v8 = vld [vmem:[%s742_s23 + $0x68] sm:$0xff] }
  0x16   : > { %140 = vst [vmem:[%s747_s24 + $0x30] sm:$0xff] %v139_v6  ;;  %142 = vst [vmem:[%s747_s24 + $0x38] sm:$0xff] %v141_v7  ;;  %v145_v9 = vld [vmem:[%s742_s23 + $0x70] sm:$0xff]  ;;  %v147_v10 = vld [vmem:[%s742_s23 + $0xa0] sm:$0xff] }
  0x17   : > { %144 = vst [vmem:[%s747_s24 + $0x40] sm:$0xff] %v143_v8  ;;  %v149_v11 = vld [vmem:[%s742_s23 + $0xa8] sm:$0xff]  ;;  %146 = vst [vmem:[%s747_s24 + $0x48] sm:$0xff] %v145_v9  ;;  %v151_v12 = vld [vmem:[%s742_s23 + $0xb0] sm:$0xff] }
  0x18   : > { %148 = vst [vmem:[%s747_s24 + $0x50] sm:$0xff] %v147_v10  ;;  %150 = vst [vmem:[%s747_s24 + $0x58] sm:$0xff] %v149_v11  ;;  %v153_v13 = vld [vmem:[%s742_s23 + $0xb8] sm:$0xff]  ;;  %v155_v14 = vld [vmem:[%s742_s23 + $0xc0] sm:$0xff] }
  0x19   : > { %152 = vst [vmem:[%s747_s24 + $0x60] sm:$0xff] %v151_v12  ;;  %154 = vst [vmem:[%s747_s24 + $0x68] sm:$0xff] %v153_v13  ;;  %v157_v15 = vld [vmem:[%s742_s23 + $0xf0] sm:$0xff]  ;;  %v159_v16 = vld [vmem:[%s742_s23 + $0xf8] sm:$0xff] }
  0x1a   : > { %156 = vst [vmem:[%s747_s24 + $0x70] sm:$0xff] %v155_v14  ;;  %v161_v17 = vld [vmem:[%s742_s23 + $0x100] sm:$0xff]  ;;  %158 = vst [vmem:[%s747_s24 + $0x78] sm:$0xff] %v157_v15  ;;  %v163_v18 = vld [vmem:[%s742_s23 + $0x108] sm:$0xff] }
  0x1b   : > { %160 = vst [vmem:[%s747_s24 + $0x80] sm:$0xff] %v159_v16  ;;  %162 = vst [vmem:[%s747_s24 + $0x88] sm:$0xff] %v161_v17  ;;  %v165_v19 = vld [vmem:[%s742_s23 + $0x110] sm:$0xff]  ;;  %v167_v20 = vld [vmem:[%s742_s23 + $0x140] sm:$0xff] }
  0x1c   : > { %164 = vst [vmem:[%s747_s24 + $0x90] sm:$0xff] %v163_v18  ;;  %166 = vst [vmem:[%s747_s24 + $0x98] sm:$0xff] %v165_v19  ;;  %v169_v21 = vld [vmem:[%s742_s23 + $0x148] sm:$0xff]  ;;  %v171_v22 = vld [vmem:[%s742_s23 + $0x150] sm:$0xff] }
  0x1d   : > { %168 = vst [vmem:[%s747_s24 + $0xa0] sm:$0xff] %v167_v20  ;;  %v173_v23 = vld [vmem:[%s742_s23 + $0x158] sm:$0xff]  ;;  %170 = vst [vmem:[%s747_s24 + $0xa8] sm:$0xff] %v169_v21  ;;  %v175_v24 = vld [vmem:[%s742_s23 + $0x160] sm:$0xff] }
  0x1e   : > { %172 = vst [vmem:[%s747_s24 + $0xb0] sm:$0xff] %v171_v22  ;;  %174 = vst [vmem:[%s747_s24 + $0xb8] sm:$0xff] %v173_v23  ;;  %v177_v25 = vld [vmem:[%s742_s23 + $0x190] sm:$0xff]  ;;  %v179_v26 = vld [vmem:[%s742_s23 + $0x198] sm:$0xff] }
  0x1f   : > { %176 = vst [vmem:[%s747_s24 + $0xc0] sm:$0xff] %v175_v24  ;;  %178 = vst [vmem:[%s747_s24 + $0xc8] sm:$0xff] %v177_v25  ;;  %v181_v27 = vld [vmem:[%s742_s23 + $0x1a0] sm:$0xff]  ;;  %v183_v28 = vld [vmem:[%s742_s23 + $0x1a8] sm:$0xff] }
  0x20   : > { %180 = vst [vmem:[%s747_s24 + $0xd0] sm:$0xff] %v179_v26  ;;  %v185_v29 = vld [vmem:[%s742_s23 + $0x1b0] sm:$0xff]  ;;  %182 = vst [vmem:[%s747_s24 + $0xd8] sm:$0xff] %v181_v27 }
  0x21   : > { %184 = vst [vmem:[%s747_s24 + $0xe0] sm:$0xff] %v183_v28  ;;  %186 = vst [vmem:[%s747_s24 + $0xe8] sm:$0xff] %v185_v29 }
  0x22 PF: > { %192 = sbr.rel (!%p730_p3) target bundleno = 47 (0x2f), region = 43  ;;  %s194_s25 = sand.u32 (%p730_p3), 1, %s680_s10  }
  0x23   : > { %s632_s26 = smul.u32 (%p730_p3), 40, %s684_s11 }
  0x24   : > { %s634_s27 = smul.u32 (%p730_p3), 120, %s194_s25 }
  0x25   : > { %s199_s30 = scalar_lea.vmem (%p730_p3), %s915_s1, %s632_s26 }
  0x26   : > { %v212_v30 = vld [vmem:[%s199_s30] sm:$0xff] (%p730_p3)  ;;  %v214_v31 = vld [vmem:[%s199_s30 + $0x8] sm:$0xff] (%p730_p3)  ;;  %v216_v32 = vld [vmem:[%s199_s30 + $0x10] sm:$0xff] (%p730_p3)  ;;  %s196_s3 = scalar_lea.vmem (%p730_p3), [#allocation3], %s634_s27 }
  0x27   : > { %213 = vst [vmem:[%s196_s3] sm:$0xff] (%p730_p3), %v212_v30  ;;  %215 = vst [vmem:[%s196_s3 + $0x8] sm:$0xff] (%p730_p3), %v214_v31  ;;  %v218_v33 = vld [vmem:[%s199_s30 + $0x18] sm:$0xff] (%p730_p3)  ;;  %v220_v34 = vld [vmem:[%s199_s30 + $0x20] sm:$0xff] (%p730_p3) }
  0x28   : > { %217 = vst [vmem:[%s196_s3 + $0x10] sm:$0xff] (%p730_p3), %v216_v32  ;;  %v222_v35 = vld [vmem:[%s199_s30 + $0x50] sm:$0xff] (%p730_p3)  ;;  %219 = vst [vmem:[%s196_s3 + $0x18] sm:$0xff] (%p730_p3), %v218_v33  ;;  %v224_v36 = vld [vmem:[%s199_s30 + $0x58] sm:$0xff] (%p730_p3) }
  0x29   : > { %221 = vst [vmem:[%s196_s3 + $0x20] sm:$0xff] %v220_v34  ;;  %223 = vst [vmem:[%s196_s3 + $0x28] sm:$0xff] %v222_v35  ;;  %v226_v37 = vld [vmem:[%s199_s30 + $0x60] sm:$0xff]  ;;  %v228_v38 = vld [vmem:[%s199_s30 + $0x68] sm:$0xff] }
  0x2a   : > { %225 = vst [vmem:[%s196_s3 + $0x30] sm:$0xff] %v224_v36  ;;  %227 = vst [vmem:[%s196_s3 + $0x38] sm:$0xff] %v226_v37  ;;  %v230_v39 = vld [vmem:[%s199_s30 + $0x70] sm:$0xff]  ;;  %v232_v40 = vld [vmem:[%s199_s30 + $0xa0] sm:$0xff] }
  0x2b   : > { %229 = vst [vmem:[%s196_s3 + $0x40] sm:$0xff] %v228_v38  ;;  %v234_v41 = vld [vmem:[%s199_s30 + $0xa8] sm:$0xff]  ;;  %231 = vst [vmem:[%s196_s3 + $0x48] sm:$0xff] %v230_v39  ;;  %v236_v42 = vld [vmem:[%s199_s30 + $0xb0] sm:$0xff] }
  0x2c   : > { %233 = vst [vmem:[%s196_s3 + $0x50] sm:$0xff] %v232_v40  ;;  %235 = vst [vmem:[%s196_s3 + $0x58] sm:$0xff] %v234_v41  ;;  %v238_v43 = vld [vmem:[%s199_s30 + $0xb8] sm:$0xff]  ;;  %v240_v44 = vld [vmem:[%s199_s30 + $0xc0] sm:$0xff] }
  0x2d   : > { %237 = vst [vmem:[%s196_s3 + $0x60] sm:$0xff] %v236_v42  ;;  %239 = vst [vmem:[%s196_s3 + $0x68] sm:$0xff] %v238_v43 }
  0x2e   : > { %241 = vst [vmem:[%s196_s3 + $0x70] sm:$0xff] %v240_v44 }
  0x2f PF: > { %p627_p5 = scmp.ge.s32.totalorder %s684_s11, 1  ;;  %p246_p6 = scmp.lt.s32.totalorder %s684_s11, 3 }
  0x31   : > { %p247_p7 = pnand %p627_p5, %p246_p6 }
  0x32   : > { %s253_s4 = sand.u32 (!%p247_p7), 1, %s676_s9   ;;  %vm369_vm0 = vcmask (!%p247_p7), 1040384   ;;  %s287_s9 = smul.u32 (!%p247_p7), 5, %s621_s12  ;;  %vm522_vm1 = vcmask (!%p247_p7), 1041409   ;;  %vm524_vm2 = vcmask (!%p247_p7), 1043459   ;;  %vm526_vm3 = vcmask (!%p247_p7), 1045509  }
  0x33   : > { %250 = sbr.rel (%p247_p7) target bundleno = 112 (0x70), region = 66  ;;  %vm528_vm4 = vcmask (!%p247_p7), 1047559  }
  0x34   : > { %s635_s5 = smul.u32 (!%p247_p7), 240, %s253_s4  ;;  %p288_p8 = scmp.lt.s32.totalorder (!%p247_p7), %s287_s9, 9 }
  0x35   : > { %s636_s6 = smul.u32 (!%p247_p7), 120, %s253_s4 }
  0x36   : > { %s816_s7 = scalar_lea.vmem (!%p247_p7), [#allocation2], %s635_s5 }
  0x37   : > { %v293_v45 = vld [vmem:[%s816_s7] sm:$0xff] (!%p247_p7)  ;;  %v294_v46 = vld [vmem:[%s816_s7 + $0x8] sm:$0xff] (!%p247_p7)  ;;  %v295_v47 = vld [vmem:[%s816_s7 + $0x10] sm:$0xff] (!%p247_p7)  ;;  %s830_s8 = scalar_lea.vmem (!%p247_p7), [#allocation3], %s636_s6 }
  0x38   : > { %v296_v48 = vld [vmem:[%s816_s7 + $0x18] sm:$0xff] (!%p247_p7)  ;;  %v297_v49 = vld [vmem:[%s816_s7 + $0x20] sm:$0xff] (!%p247_p7)  ;;  %v298_v50 = vld [vmem:[%s816_s7 + $0x28] sm:$0xff] (!%p247_p7) }
  0x39   : > { %v303_v51 = vld [vmem:[%s816_s7 + $0x50] sm:$0x1] (!%p247_p7)  ;;  %v300_v53 = vld [vmem:[%s816_s7 + $0x38] sm:$0xff] (!%p247_p7)  ;;  %v305_v55 = vld [vmem:[%s816_s7 + $0x60] sm:$0x1] (!%p247_p7) }
  0x3a   : > { %v299_v52 = vld [vmem:[%s816_s7 + $0x30] sm:$0xff]  ;;  %v304_v54 = vld [vmem:[%s816_s7 + $0x58] sm:$0x1]  ;;  %v323_v57 = vld [vmem:[%s830_s8] sm:$0xff]  ;;  %s922_s9 = smov (!%p288_p8, %s287_s9), 9 }
  0x3b   : > { %v308_v56 = vld [vmem:[%s816_s7 + $0x78] sm:$0xff]  ;;  %v301_v58 = vld [vmem:[%s816_s7 + $0x40] sm:$0xff]  ;;  %v302_v59 = vld [vmem:[%s816_s7 + $0x48] sm:$0xff]  ;;  %v338_v7 = vmul.f32 %v323_v57, %v293_v45  ;;  %s628_s11 = sshll.u32 %s922_s9, 1 }
  0x3c   : > { %v306_v60 = vld [vmem:[%s816_s7 + $0x68] sm:$0x1]  ;;  %v309_v61 = vld [vmem:[%s816_s7 + $0x80] sm:$0xff]  ;;  %v307_v0 = vld [vmem:[%s816_s7 + $0x70] sm:$0x1]  ;;  %v353_v16 = vmul.f32 %v323_v57, %v308_v56  ;;  %s291_s15 = scalar_lea.vmem %s916_s2, %s628_s11 }
  0x3d   : > { %v310_v62 = vld [vmem:[%s816_s7 + $0x88] sm:$0xff]  ;;  %v313_v1 = vld [vmem:[%s816_s7 + $0xa0] sm:$0xff]  ;;  %v315_v3 = vld [vmem:[%s816_s7 + $0xb0] sm:$0xff] }
  0x3e   : > { %v324_v63 = vld [vmem:[%s830_s8 + $0x8] sm:$0xff]  ;;  %v325_v4 = vld [vmem:[%s830_s8 + $0x10] sm:$0xff]  ;;  %v845_v5 = vld [vmem:[%s830_s8 + $0x18] sm:$0xff] }
  0x3f   : > { %v314_v2 = vld [vmem:[%s816_s7 + $0xa8] sm:$0xff]  ;;  %v319_v9 = vld [vmem:[%s816_s7 + $0xd0] sm:$0x1]  ;;  %v339_v13 = vmul.f32 %v324_v63, %v294_v46  ;;  %v340_v14 = vmul.f32 %v325_v4, %v295_v47  ;;  %v341_v15 = vmul.f32 %v845_v5, %v296_v48  ;;  %v330_v17 = vld [vmem:[%s830_s8 + $0x38] sm:$0xff]  ;;  %v354_v23 = vmul.f32 %v324_v63, %v309_v61 }
  0x40   : > { %v848_v6 = vld [vmem:[%s830_s8 + $0x20] sm:$0xff]  ;;  %v328_v10 = vld [vmem:[%s830_s8 + $0x28] sm:$0xff]  ;;  %v329_v11 = vld [vmem:[%s830_s8 + $0x30] sm:$0xff]  ;;  %v345_v28 = vmul.f32 %v330_v17, %v300_v53  ;;  %v355_v35 = vmul.f32 %v325_v4, %v310_v62  ;;  %v360_v39 = vmul.f32 %v330_v17, %v315_v3 }
  0x41   : > { %v318_v8 = vld [vmem:[%s816_s7 + $0xc8] sm:$0x1]  ;;  %v333_v12 = vld [vmem:[%s830_s8 + $0x50] sm:$0x1]  ;;  %v334_v18 = vld [vmem:[%s830_s8 + $0x58] sm:$0x1]  ;;  %v342_v20 = vmul.f32 %v848_v6, %v297_v49  ;;  %v343_v21 = vmul.f32 %v328_v10, %v298_v50  ;;  %v344_v27 = vmul.f32 %v329_v11, %v299_v52  ;;  %v358_v37 = vmul.f32 %v328_v10, %v313_v1 }
  0x42   : > { %v335_v19 = vld [vmem:[%s830_s8 + $0x60] sm:$0x1]  ;;  %v348_v22 = vmul.f32 %v333_v12, %v303_v51  ;;  %v864_v25 = vld [vmem:[%s830_s8 + $0x48] sm:$0xff]  ;;  %v349_v29 = vmul.f32 %v334_v18, %v304_v54  ;;  %v870_v31 = vld [vmem:[%s830_s8 + $0x70] sm:$0x1]  ;;  %v359_v38 = vmul.f32 %v329_v11, %v314_v2  ;;  %v363_v40 = vmul.f32 %v333_v12, %v318_v8 }
  0x43   : > { %v861_v24 = vld [vmem:[%s830_s8 + $0x40] sm:$0xff]  ;;  %v867_v26 = vld [vmem:[%s830_s8 + $0x68] sm:$0x1]  ;;  %v350_v30 = vmul.f32 %v335_v19, %v305_v55  ;;  %v347_v33 = vmul.f32 %v864_v25, %v302_v59  ;;  %v352_v36 = vmul.f32 %v870_v31, %v307_v0  ;;  %v364_v41 = vmul.f32 %v334_v18, %v319_v9  ;;  %v320_v52 = vld [vmem:[%s816_s7 + $0xd8] sm:$0x1] }
  0x44   : > { %v346_v32 = vmul.f32 %v861_v24, %v301_v58  ;;  %v351_v34 = vmul.f32 %v867_v26, %v306_v60  ;;  %v368_v42 = vadd.f32 %v343_v21, %v338_v7  ;;  %v370_v43 = vsel %vm369_vm0, %v348_v22, 0.0  ;;  %v311_v7 = vld [vmem:[%s816_s7 + $0x90] sm:$0xff] }
  0x45   : > { %v378_v44 = vadd.f32 %v344_v27, %v339_v13  ;;  %v379_v45 = vsel %vm369_vm0, %v349_v29, 0.0  ;;  %v387_v46 = vadd.f32 %v345_v28, %v340_v14  ;;  %v388_v47 = vsel %vm369_vm0, %v350_v30, 0.0  ;;  %v312_v14 = vld [vmem:[%s816_s7 + $0x98] sm:$0xff]  ;;  %v322_v27 = vld [vmem:[%s816_s7 + $0xe8] sm:$0x1] }
  0x46   : > { %v371_v48 = vadd.f32 %v370_v43, %v368_v42  ;;  %v396_v49 = vadd.f32 %v346_v32, %v341_v15  ;;  %v397_v50 = vsel %vm369_vm0, %v351_v34, 0.0  ;;  %v405_v51 = vadd.f32 %v347_v33, %v342_v20  ;;  %v316_v15 = vld [vmem:[%s816_s7 + $0xb8] sm:$0xff]  ;;  %v321_v20 = vld [vmem:[%s816_s7 + $0xe0] sm:$0x1] }
  0x47   : > { %v380_v53 = vadd.f32 %v379_v45, %v378_v44  ;;  %v389_v54 = vadd.f32 %v388_v47, %v387_v46  ;;  %v406_v55 = vsel %vm369_vm0, %v352_v36, 0.0  ;;  %v414_v56 = vadd.f32 %v358_v37, %v353_v16 }
  0x48   : > { %v372_v57 = vrot.slane %v371_v48, 4  ;;  %v398_v58 = vadd.f32 %v397_v50, %v396_v49  ;;  %v407_v59 = vadd.f32 %v406_v55, %v405_v51  ;;  %v415_v60 = vsel %vm369_vm0, %v363_v40, 0.0 }
  0x49   : > { %v381_v61 = vrot.slane %v380_v53, 4  ;;  %v390_v62 = vrot.slane %v389_v54, 4  ;;  %v416_v63 = vadd.f32 %v415_v60, %v414_v56  ;;  %v423_v0 = vadd.f32 %v359_v38, %v354_v23 }
  0x4a   : > { %v365_v1 = vmul.f32 %v335_v19, %v320_v52  ;;  %v373_v2 = vadd.f32 %v372_v57, %v371_v48  ;;  %v399_v3 = vrot.slane %v398_v58, 4  ;;  %v424_v4 = vsel %vm369_vm0, %v364_v41, 0.0  ;;  %v317_v19 = vld [vmem:[%s816_s7 + $0xc0] sm:$0xff] }
  0x4b   : > { %v382_v8 = vadd.f32 %v381_v61, %v380_v53  ;;  %v391_v9 = vadd.f32 %v390_v62, %v389_v54  ;;  %v417_v10 = vrot.slane %v416_v63, 4  ;;  %v425_v11 = vadd.f32 %v424_v4, %v423_v0 }
  0x4c   : > { %v400_v12 = vadd.f32 %v399_v3, %v398_v58  ;;  %v432_v13 = vadd.f32 %v360_v39, %v355_v35  ;;  %v408_v16 = vrot.slane %v407_v59, 4  ;;  %v356_v21 = vmul.f32 %v845_v5, %v311_v7 }
  0x4d   : > { %v418_v17 = vadd.f32 %v417_v10, %v416_v63  ;;  %v426_v18 = vrot.slane %v425_v11, 4  ;;  %v374_v22 = vrot.slane %v373_v2, 2  ;;  %v433_v23 = vsel %vm369_vm0, %v365_v1, 0.0 }
  0x4e   : > { %v383_v28 = vrot.slane %v382_v8, 2  ;;  %v392_v29 = vrot.slane %v391_v9, 2  ;;  %v401_v30 = vrot.slane %v400_v12, 2  ;;  %v357_v33 = vmul.f32 %v848_v6, %v312_v14 }
  0x4f   : > { %v427_v32 = vadd.f32 %v426_v18, %v425_v11  ;;  %v361_v34 = vmul.f32 %v861_v24, %v316_v15  ;;  %v419_v35 = vrot.slane %v418_v17, 2  ;;  %v434_v36 = vadd.f32 %v433_v23, %v432_v13 }
  0x50   : > { %v362_v37 = vmul.f32 %v864_v25, %v317_v19  ;;  %v366_v38 = vmul.f32 %v867_v26, %v321_v20  ;;  %v409_v39 = vadd.f32 %v408_v16, %v407_v59  ;;  %v367_v40 = vmul.f32 %v870_v31, %v322_v27 }
  0x51   : > { %v428_v5 = vrot.slane %v427_v32, 2  ;;  %v375_v41 = vadd.f32 %v374_v22, %v373_v2  ;;  %v435_v42 = vrot.slane %v434_v36, 4  ;;  %v384_v43 = vadd.f32 %v383_v28, %v382_v8 }
  0x52   : > { %v393_v44 = vadd.f32 %v392_v29, %v391_v9  ;;  %v402_v45 = vadd.f32 %v401_v30, %v400_v12  ;;  %v474_v46 = vlaneseq  ;;  %v420_v47 = vadd.f32 %v419_v35, %v418_v17 }
  0x53   : > { %v429_v6 = vadd.f32 %v428_v5, %v427_v32  ;;  %v436_v48 = vadd.f32 %v435_v42, %v434_v36  ;;  %v441_v24 = vadd.f32 %v361_v34, %v356_v21  ;;  %v410_v49 = vrot.slane %v409_v39, 2 }
  0x54   : > { %v442_v50 = vsel %vm369_vm0, %v366_v38, 0.0  ;;  %v450_v25 = vadd.f32 %v362_v37, %v357_v33  ;;  %v686_v51 = vmov 1983009808   ;;  %v376_v52 = vrot.slane %v375_v41, 1 }
  0x55   : > { %v472_v26 = vunpack.c.l.s4 %v686_v51  ;;  %v437_v53 = vrot.slane %v436_v48, 2  ;;  %v443_v54 = vadd.f32 %v442_v50, %v441_v24  ;;  %v451_v31 = vsel %vm369_vm0, %v367_v40, 0.0 }
  0x56   : > { %v385_v55 = vrot.slane %v384_v43, 1  ;;  %v394_v56 = vrot.slane %v393_v44, 1  ;;  %v403_v57 = vrot.slane %v402_v45, 1  ;;  %v452_v58 = vadd.f32 %v451_v31, %v450_v25 }
  0x57   : > { %v421_v59 = vrot.slane %v420_v47, 1  ;;  %v430_v60 = vrot.slane %v429_v6, 1  ;;  %v438_v61 = vadd.f32 %v437_v53, %v436_v48  ;;  %v444_v62 = vrot.slane %v443_v54, 4 }
  0x58   : > { %v411_v63 = vadd.f32 %v410_v49, %v409_v39  ;;  %v453_v0 = vrot.slane %v452_v58, 4  ;;  %v377_v1 = vadd.f32 %v376_v52, %v375_v41  ;;  %v473_v3 = vunpack.c.0.s8 %v472_v26 }
  0x59   : > { %v445_v2 = vadd.f32 %v444_v62, %v443_v54  ;;  %v475_v4 = vshrl.u32 %v474_v46, 7  ;;  %v386_v7 = vadd.f32 %v385_v55, %v384_v43  ;;  %v395_v8 = vadd.f32 %v394_v56, %v393_v44 }
  0x5a   : > { %v404_v9 = vadd.f32 %v403_v57, %v402_v45  ;;  %v454_v10 = vadd.f32 %v453_v0, %v452_v58  ;;  %v422_v11 = vadd.f32 %v421_v59, %v420_v47  ;;  %v431_v12 = vadd.f32 %v430_v60, %v429_v6 }
  0x5b   : > { %v439_v13 = vrot.slane %v438_v61, 1  ;;  %v446_v14 = vrot.slane %v445_v2, 2  ;;  %v412_v15 = vrot.slane %v411_v63, 1  ;;  %v469_v19 = vcombine.low %v377_v1, %v386_v7 }
  0x5c   : > { %v455_v16 = vrot.slane %v454_v10, 2  ;;  %v476_v20 = vsub.s32 %v473_v3, %v475_v4  ;;  %v470_v23 = vcombine.low %v395_v8, %v404_v9  ;;  %v493_v27 = vcombine.low %v422_v11, %v431_v12 }
  0x5d   : > { %v447_v17 = vadd.f32 %v446_v14, %v445_v2  ;;  %v440_v21 = vadd.f32 %v439_v13, %v438_v61  ;;  %v413_v28 = vadd.f32 %v412_v15, %v411_v63 }
  0x5e   : > { %v456_v18 = vadd.f32 %v455_v16, %v454_v10  ;;  %v477_v33 = vrot.slane %v469_v19, %v476_v20  ;;  %v484_v34 = vrot.slane %v470_v23, %v476_v20  ;;  %v501_v36 = vrot.slane %v493_v27, %v476_v20 }
  0x5f   : > { %v448_v22 = vrot.slane %v447_v17, 1  ;;  %v492_v37 = vrot.slane %v413_v28, %v476_v20 }
  0x60   : > { %v457_v29 = vrot.slane %v456_v18, 1  ;;  %v485_v40 = vcombine.low %v477_v33, %v484_v34 }
  0x61   : > { %v449_v30 = vadd.f32 %v448_v22, %v447_v17 }
  0x62   : > { %v458_v32 = vadd.f32 %v457_v29, %v456_v18 }
  0x63   : > { %v494_v35 = vcombine.low %v440_v21, %v449_v30 }
  0x64   : > { %v516_v38 = vrot.slane %v458_v32, %v476_v20 }
  0x65   : > { %v508_v39 = vrot.slane %v494_v35, %v476_v20 }
  0x66   : > { %v532_v5 = vrot.slane %v516_v38, 7 }
  0x67   : > { %v509_v41 = vcombine.low %v501_v36, %v508_v39 }
  0x68   : > { %v533_v42 = vsel %vm522_vm1, %v532_v5, %v492_v37 }
  0x69   : > { %v521_v43 = vrot.slane %v509_v41, 7  ;;  %v534_v44 = vsel %vm524_vm2, %v532_v5, %v533_v42 }
  0x6a   : > { %v535_v45 = vsel %vm526_vm3, %v532_v5, %v534_v44 }
  0x6b   : > { %v523_v46 = vsel %vm522_vm1, %v521_v43, %v485_v40  ;;  %v536_v47 = vsel %vm528_vm4, %v532_v5, %v535_v45 }
  0x6c   : > { %v525_v6 = vsel %vm524_vm2, %v521_v43, %v523_v46  ;;  %540 = vst [vmem:[%s291_s15 + $0x8] sm:$0x3] %v536_v47 }
  0x6d   : > { %v527_v48 = vsel %vm526_vm3, %v521_v43, %v525_v6 }
  0x6e   : > { %v529_v24 = vsel %vm528_vm4, %v521_v43, %v527_v48 }
  0x6f   : > { %539 = vst [vmem:[%s291_s15] sm:$0xff] %v529_v24 }
  0x70 PF: > { %p9_p9 = scmp.ge.s32.totalorder %s719_s13, 4   ;;  %s918_s9 = smov %s680_s10 }
  0x71   : > { %s919_s10 = smov %s728_s16  ;;  %s920_s11 = smov %s719_s13 }
  0x72   :  { %11 = sbr.rel (!%p9_p9) target bundleno = 2 (0x2), region = 117 }

</bundles_post_ra>
